<compile_context>
chip_gen: v6e
topology: v6e:2x2x1
jax: 0.10.0
libtpu: 0.0.40
codegen_flags: <defaults>
</compile_context>

<pallas_src>
import functools
import math

import jax
import jax.numpy as jnp
from jax import lax
from jax.experimental import pallas as pl
from jax.experimental.pallas import tpu as pltpu

MM_DTYPE = jnp.bfloat16    # MXU operand dtype (f32 accumulation everywhere)
ACT_DTYPE = jnp.bfloat16   # activation carry dtype between kernels

_MIN_VMEM = 4 * 1024 * 1024
_MAX_VMEM = 64 * 1024 * 1024   # v7x physical VMEM per TensorCore


def _vmem_limit(nbytes):
    """Explicit scoped-VMEM request with generous headroom, capped at v7x physical."""
    return int(min(_MAX_VMEM, max(_MIN_VMEM, 4 * int(nbytes))))


# ----------------------------------------------------------------------------
# In-kernel helpers (f32 math)
# ----------------------------------------------------------------------------
def _layernorm_f32(y, gamma, beta, eps):
    mean = jnp.mean(y, axis=-1, keepdims=True)
    var = jnp.mean(jnp.square(y - mean), axis=-1, keepdims=True)
    return (y - mean) * lax.rsqrt(var + eps) * gamma + beta


def _gelu(y):
    # TODO(synk): torch.nn.GELU() default is the exact erf form; the tanh
    # approximation is used here because tanh lowers to the EUP on all TPU
    # generations (max deviation ~1e-3, below the bf16 matmul noise).
    c = math.sqrt(2.0 / math.pi)
    return 0.5 * y * (1.0 + jnp.tanh(c * (y + 0.044715 * y * y * y)))


# ----------------------------------------------------------------------------
# Plain LayerNorm kernel (embeddings) — no residual
# ----------------------------------------------------------------------------
def _ln_kernel(x_ref, g_ref, b_ref, o_ref, *, eps):
    x = x_ref[...].astype(jnp.float32)
    o_ref[...] = _layernorm_f32(x, g_ref[...], b_ref[...], eps).astype(o_ref.dtype)


def layernorm(x, gamma, beta, eps, *, block_m=512, out_dtype=ACT_DTYPE):
    n, h = x.shape
    bm = n if n <= block_m else block_m
    grid = (pl.cdiv(n, bm),)
    x_b = jnp.dtype(x.dtype).itemsize
    vmem = 2 * bm * h * (x_b + jnp.dtype(out_dtype).itemsize) + 4 * 4 * h
    return pl.pallas_call(
        functools.partial(_ln_kernel, eps=eps),
        out_shape=jax.ShapeDtypeStruct((n, h), out_dtype),
        grid_spec=pltpu.PrefetchScalarGridSpec(
            num_scalar_prefetch=0,
            grid=grid,
            in_specs=[pl.BlockSpec((bm, h), lambda i: (i, 0)),
                      pl.BlockSpec((1, h), lambda i: (0, 0)),
                      pl.BlockSpec((1, h), lambda i: (0, 0))],
            out_specs=pl.BlockSpec((bm, h), lambda i: (i, 0)),
        ),
        compiler_params=pltpu.CompilerParams(
            dimension_semantics=("parallel",),
            vmem_limit_bytes=_vmem_limit(vmem)),
        cost_estimate=pl.CostEstimate(
            flops=int(8 * n * h), transcendentals=int(n),
            bytes_accessed=int(x_b * n * h + 2 * n * h + 8 * h)),
    )(x, gamma.reshape(1, -1), beta.reshape(1, -1))


# ----------------------------------------------------------------------------
# Fused attention block: QKV proj + per-head attention + single out proj
#                        + residual add + LayerNorm.
# One grid step = one sequence of S tokens (heads split inside the kernel).
# ----------------------------------------------------------------------------
def _attn_block_kernel(x_ref, wqkv_ref, bqkv_ref, wo_ref, bo_ref, g_ref, b_ref,
                       o_ref, qkv_ref, *, num_heads, head_dim, scale, eps):
    x_in = x_ref[...]                                        # [S, H] bf16
    hidden = num_heads * head_dim

    # Fused QKV projection (one MXU pass); result landed in VMEM scratch so the
    # per-head q/k/v slices below are Ref reads, not slices of a large live f32.
    qkv_ref[...] = (jnp.dot(x_in.astype(MM_DTYPE), wqkv_ref[...],
                            preferred_element_type=jnp.float32)
                    + bqkv_ref[...])

    # Per-head softmax attention.  Each head's context lands on its lane slice;
    # the output projection is done ONCE with a full H-wide contraction.
    # TODO(synk): for BERT-base sizes (S>=512) switch to lax.fori_loop over
    # heads and a kv-tiled online softmax (flash) with m/l/acc scratch.
    ctx_parts = []
    for hd in range(num_heads):
        lo = hd * head_dim
        hi = lo + head_dim
        qh = qkv_ref[:, lo:hi].astype(MM_DTYPE)
        kh = qkv_ref[:, hidden + lo:hidden + hi].astype(MM_DTYPE)
        vh = qkv_ref[:, 2 * hidden + lo:2 * hidden + hi].astype(MM_DTYPE)

        s = jnp.dot(qh, kh.T, preferred_element_type=jnp.float32) * scale
        m = jnp.max(s, axis=-1, keepdims=True)
        p = jnp.exp(s - m)
        p = p * pl.reciprocal(jnp.sum(p, axis=-1, keepdims=True), approx=True)
        ctx_parts.append(jnp.dot(p.astype(MM_DTYPE), vh,
                                 preferred_element_type=jnp.float32))
    ctx = jnp.concatenate(ctx_parts, axis=-1)                # [S, H] f32

    # Single full-width output projection (contraction = H -> full MXU).
    attn = (jnp.dot(ctx.astype(MM_DTYPE), wo_ref[...],
                    preferred_element_type=jnp.float32) + bo_ref[...])
    y = attn + x_in.astype(jnp.float32)                      # residual add
    o_ref[...] = _layernorm_f32(y, g_ref[...], b_ref[...], eps).astype(o_ref.dtype)


def attention_block(x, wqkv, bqkv, wo, bo, gamma, beta, *,
                    batch, seq, num_heads, head_dim, eps):
    n, h = x.shape
    th = wqkv.shape[1]
    kernel = functools.partial(
        _attn_block_kernel, num_heads=num_heads, head_dim=head_dim,
        scale=1.0 / math.sqrt(head_dim), eps=eps)

    act_b = jnp.dtype(ACT_DTYPE).itemsize
    w_b = jnp.dtype(MM_DTYPE).itemsize
    flops = (2 * n * h * th                                   # qkv projection
             + 4 * batch * num_heads * seq * seq * head_dim   # qk^T and pv
             + 2 * n * h * h)                                 # out projection
    bytes_accessed = int(act_b * 2 * n * h + w_b * (h * th + h * h)
                         + 4 * (th + 3 * h))
    # footprint: double-buffered x/out blocks + resident bf16 weights +
    # f32 qkv scratch + headroom for per-head [S,S] scores.
    vmem = (2 * 2 * seq * h * act_b
            + 2 * (h * th + h * h) * w_b
            + seq * th * 4
            + 4 * seq * seq * 4)

    return pl.pallas_call(
        kernel,
        out_shape=jax.ShapeDtypeStruct((n, h), ACT_DTYPE),
        grid_spec=pltpu.PrefetchScalarGridSpec(
            num_scalar_prefetch=0,
            grid=(batch,),
            in_specs=[
                pl.BlockSpec((seq, h), lambda b: (b, 0)),   # x (one sequence)
                pl.BlockSpec((h, th), lambda b: (0, 0)),    # wqkv (bf16, resident)
                pl.BlockSpec((1, th), lambda b: (0, 0)),    # bqkv (f32)
                pl.BlockSpec((h, h), lambda b: (0, 0)),     # wo   (bf16, resident)
                pl.BlockSpec((1, h), lambda b: (0, 0)),     # bo
                pl.BlockSpec((1, h), lambda b: (0, 0)),     # ln gamma
                pl.BlockSpec((1, h), lambda b: (0, 0)),     # ln beta
            ],
            out_specs=pl.BlockSpec((seq, h), lambda b: (b, 0)),
            scratch_shapes=[pltpu.VMEM((seq, th), jnp.float32)],  # qkv scratch
        ),
        compiler_params=pltpu.CompilerParams(
            dimension_semantics=("parallel",),
            vmem_limit_bytes=_vmem_limit(vmem)),
        cost_estimate=pl.CostEstimate(
            flops=int(flops),
            transcendentals=int(batch * num_heads * seq * seq + n),
            bytes_accessed=bytes_accessed),
    )(x, wqkv, bqkv.reshape(1, -1), wo, bo.reshape(1, -1),
      gamma.reshape(1, -1), beta.reshape(1, -1))


# ----------------------------------------------------------------------------
# Fused FFN block: fc1 + GELU + fc2 + residual add + LN.
# Grid = (token tiles [parallel], intermediate-dim tiles [arbitrary]); the fc2
# result is accumulated in a f32 VMEM scratch, residual+LN on the last K step.
# ----------------------------------------------------------------------------
def _ffn_block_kernel(x_ref, w1_ref, b1_ref, w2_ref, b2_ref, g_ref, b_ref,
                      o_ref, acc_ref, *, eps):
    k = pl.program_id(1)

    @pl.when(k == 0)
    def _():
        acc_ref[...] = jnp.zeros_like(acc_ref)

    x_in = x_ref[...]                                         # [bm, H] bf16
    hmid = (jnp.dot(x_in.astype(MM_DTYPE), w1_ref[...],
                    preferred_element_type=jnp.float32) + b1_ref[...])
    hmid = _gelu(hmid)
    acc_ref[...] += jnp.dot(hmid.astype(MM_DTYPE), w2_ref[...],
                            preferred_element_type=jnp.float32)

    @pl.when(k == pl.num_programs(1) - 1)
    def _():
        y = acc_ref[...] + b2_ref[...] + x_in.astype(jnp.float32)   # residual
        o_ref[...] = _layernorm_f32(y, g_ref[...], b_ref[...], eps).astype(o_ref.dtype)


def ffn_block(x, w1, b1, w2, b2, gamma, beta, *, eps, block_m=512, block_k=1024):
    n, h = x.shape
    i_dim = w1.shape[1]
    bm = n if n <= block_m else block_m
    bk = i_dim if i_dim <= block_k else block_k               # K-tiling (v7x/v5e VMEM)
    grid = (pl.cdiv(n, bm), pl.cdiv(i_dim, bk))

    act_b = jnp.dtype(ACT_DTYPE).itemsize
    w_b = jnp.dtype(MM_DTYPE).itemsize
    flops = 4 * n * h * i_dim
    bytes_accessed = int(act_b * 2 * n * h + w_b * 2 * h * i_dim + 4 * (i_dim + 3 * h))
    vmem = (2 * 2 * bm * h * act_b                 # x + out blocks (double buffered)
            + 2 * 2 * h * bk * w_b                 # w1 + w2 tiles (double buffered)
            + bm * h * 4                           # accumulator scratch
            + bm * bk * 4                          # hmid live value
            + 4 * 4 * (bk + 3 * h))                # biases / ln params

    return pl.pallas_call(
        functools.partial(_ffn_block_kernel, eps=eps),
        out_shape=jax.ShapeDtypeStruct((n, h), ACT_DTYPE),
        grid_spec=pltpu.PrefetchScalarGridSpec(
            num_scalar_prefetch=0,
            grid=grid,
            in_specs=[
                pl.BlockSpec((bm, h), lambda i, k: (i, 0)),      # x (resident over k)
                pl.BlockSpec((h, bk), lambda i, k: (0, k)),      # w1 tile (bf16)
                pl.BlockSpec((1, bk), lambda i, k: (0, k)),      # b1 tile
                pl.BlockSpec((bk, h), lambda i, k: (k, 0)),      # w2 tile (bf16)
                pl.BlockSpec((1, h), lambda i, k: (0, 0)),       # b2
                pl.BlockSpec((1, h), lambda i, k: (0, 0)),       # ln gamma
                pl.BlockSpec((1, h), lambda i, k: (0, 0)),       # ln beta
            ],
            out_specs=pl.BlockSpec((bm, h), lambda i, k: (i, 0)),
            scratch_shapes=[pltpu.VMEM((bm, h), jnp.float32)],   # fc2 accumulator
        ),
        compiler_params=pltpu.CompilerParams(
            dimension_semantics=("parallel", "arbitrary"),
            vmem_limit_bytes=_vmem_limit(vmem)),
        cost_estimate=pl.CostEstimate(
            flops=int(flops), transcendentals=int(n * i_dim + n),
            bytes_accessed=bytes_accessed),
    )(x, w1, b1.reshape(1, -1), w2, b2.reshape(1, -1),
      gamma.reshape(1, -1), beta.reshape(1, -1))


# ----------------------------------------------------------------------------
# Pooler: dense + tanh on the first token of each sequence
# ----------------------------------------------------------------------------
def _pooler_kernel(x_ref, w_ref, b_ref, o_ref):
    y = jnp.dot(x_ref[...].astype(MM_DTYPE), w_ref[...],
                preferred_element_type=jnp.float32) + b_ref[...]
    o_ref[...] = jnp.tanh(y).astype(o_ref.dtype)


def pooler(first_tokens, w, b):
    bsz, h = first_tokens.shape
    return pl.pallas_call(
        _pooler_kernel,
        out_shape=jax.ShapeDtypeStruct((bsz, h), ACT_DTYPE),
    )(first_tokens, w, b.reshape(1, -1))


# ----------------------------------------------------------------------------
# Model config / parameters (deterministic synthetic init)
# ----------------------------------------------------------------------------
class Config:
    vocab_size = 64
    hidden_size = 32            # smoke-test size (lane axis under-filled; use >=128 for perf)
    num_attention_heads = 4
    intermediate_size = 64
    max_position_embeddings = 16
    type_vocab_size = 2
    num_hidden_layers = 2
    layer_norm_eps = 1e-12


def init_params(key, cfg: Config):
    H, I = cfg.hidden_size, cfg.intermediate_size
    scale = 0.02

    def nrm(k, shape, dtype=jnp.float32):
        return (scale * jax.random.normal(k, shape)).astype(dtype)

    keys = jax.random.split(key, 4 + cfg.num_hidden_layers)
    params = {
        "word_emb": nrm(keys[0], (cfg.vocab_size, H)),
        "pos_emb": nrm(keys[1], (cfg.max_position_embeddings, H)),
        "type_emb": nrm(keys[2], (cfg.type_vocab_size, H)),
        "emb_ln_g": jnp.ones((H,), jnp.float32),
        "emb_ln_b": jnp.zeros((H,), jnp.float32),
        "wp": nrm(keys[3], (H, H), MM_DTYPE),
        "bp": jnp.zeros((H,), jnp.float32),
        "layers": [],
    }
    for li in range(cfg.num_hidden_layers):
        lk = jax.random.split(keys[4 + li], 6)
        # Fused [H, 3H] QKV weight built ONCE here (no per-forward concat).
        wqkv = jnp.concatenate([nrm(lk[0], (H, H)), nrm(lk[1], (H, H)),
                                nrm(lk[2], (H, H))], axis=1)
        params["layers"].append({
            "wqkv": wqkv.astype(MM_DTYPE),                 # [H, 3H] bf16
            "bqkv": jnp.zeros((3 * H,), jnp.float32),
            "wo": nrm(lk[3], (H, H), MM_DTYPE),
            "bo": jnp.zeros((H,), jnp.float32),
            "ln1_g": jnp.ones((H,), jnp.float32),
            "ln1_b": jnp.zeros((H,), jnp.float32),
            "w1": nrm(lk[4], (H, I), MM_DTYPE),
            "b1": jnp.zeros((I,), jnp.float32),
            "w2": nrm(lk[5], (I, H), MM_DTYPE),
            "b2": jnp.zeros((H,), jnp.float32),
            "ln2_g": jnp.ones((H,), jnp.float32),
            "ln2_b": jnp.zeros((H,), jnp.float32),
        })
    return params


# ----------------------------------------------------------------------------
# Forward pass
# ----------------------------------------------------------------------------
def bert_forward(params, input_ids, token_type_ids, position_ids, cfg: Config):
    B, S = input_ids.shape
    H = cfg.hidden_size
    nH = cfg.num_attention_heads
    dh = H // nH
    eps = cfg.layer_norm_eps

    # ---- BertEmbeddings ----
    # TODO(synk): embedding-table gathers stay in XLA glue (data-dependent row
    # gather has no rectangular BlockSpec); only the LayerNorm runs in Pallas.
    x = (params["word_emb"][input_ids]
         + params["pos_emb"][position_ids]
         + params["type_emb"][token_type_ids])            # [B, S, H] f32
    x = layernorm(x.reshape(B * S, H), params["emb_ln_g"], params["emb_ln_b"], eps)

    # ---- encoder layers: 2 fused Pallas kernels per layer ----
    for lp in params["layers"]:
        x = attention_block(x, lp["wqkv"], lp["bqkv"], lp["wo"], lp["bo"],
                            lp["ln1_g"], lp["ln1_b"],
                            batch=B, seq=S, num_heads=nH, head_dim=dh, eps=eps)
        x = ffn_block(x, lp["w1"], lp["b1"], lp["w2"], lp["b2"],
                      lp["ln2_g"], lp["ln2_b"], eps=eps)

    hidden_states = x.reshape(B, S, H)

    # ---- BertPooler: first token of each sequence, dense + tanh ----
    first_tokens = hidden_states[:, 0]                    # [B, H]
    pooled = pooler(first_tokens, params["wp"], params["bp"])
    return hidden_states, pooled


# ----------------------------------------------------------------------------
if __name__ == "__main__":
    cfg = Config()
    B, S = 2, 8

    key = jax.random.PRNGKey(0)
    kp, k1, k2 = jax.random.split(key, 3)
    params = init_params(kp, cfg)

    input_ids = jax.random.randint(k1, (B, S), 0, cfg.vocab_size, dtype=jnp.int32)
    token_type_ids = jax.random.randint(k2, (B, S), 0, cfg.type_vocab_size,
                                        dtype=jnp.int32)
    position_ids = jnp.broadcast_to(jnp.arange(S, dtype=jnp.int32), (B, S))

    fwd = jax.jit(functools.partial(bert_forward, cfg=cfg))
    hidden, pooled = fwd(params, input_ids, token_type_ids, position_ids)
    jax.block_until_ready((hidden, pooled))

    assert hidden.shape == (B, S, cfg.hidden_size)
    assert pooled.shape == (B, cfg.hidden_size)
    print("KERNEL_OK")
</pallas_src>

<mosaic_0001>
module attributes {stable_mosaic.version = 11 : i64} {
  func.func @_ln_kernel(%arg0: i32, %arg1: memref<16x32xf32, #tpu.memory_space<vmem>>, %arg2: memref<1x32xf32, #tpu.memory_space<vmem>>, %arg3: memref<1x32xf32, #tpu.memory_space<vmem>>, %arg4: memref<16x32xbf16, #tpu.memory_space<vmem>>) attributes {dimension_semantics = [#tpu.dimension_semantics<parallel>], iteration_bounds = array<i64: 1>, scalar_prefetch = 0 : i64, scratch_operands = 0 : i64, tpu.core_type = #tpu.core_type<tc>, window_params = [{transform_indices = @transform_0, window_bounds = array<i64: 16, 32>}, {pipeline_mode = #tpu.pipeline_mode<synchronous>, transform_indices = @transform_1, window_bounds = array<i64: 1, 32>}, {pipeline_mode = #tpu.pipeline_mode<synchronous>, transform_indices = @transform_2, window_bounds = array<i64: 1, 32>}, {transform_indices = @transform_3, window_bounds = array<i64: 16, 32>}]} {
    %c0 = arith.constant 0 : index
    %c0_0 = arith.constant 0 : index
    %0 = vector.load %arg1[%c0, %c0_0] : memref<16x32xf32, #tpu.memory_space<vmem>>, vector<16x32xf32>
    %c0_1 = arith.constant 0 : index
    %c0_2 = arith.constant 0 : index
    %1 = vector.load %arg2[%c0_1, %c0_2] : memref<1x32xf32, #tpu.memory_space<vmem>>, vector<1x32xf32>
    %c0_3 = arith.constant 0 : index
    %c0_4 = arith.constant 0 : index
    %2 = vector.load %arg3[%c0_3, %c0_4] : memref<1x32xf32, #tpu.memory_space<vmem>>, vector<1x32xf32>
    %cst = arith.constant dense<0.000000e+00> : vector<16xf32>
    %3 = vector.multi_reduction <add>, %0, %cst [1] : vector<16x32xf32> to vector<16xf32>
    %4 = vector.shape_cast %3 : vector<16xf32> to vector<16x1xf32>
    %cst_5 = arith.constant 3.200000e+01 : f32
    %5 = vector.broadcast %cst_5 : f32 to vector<16x1xf32>
    %6 = arith.divf %4, %5 : vector<16x1xf32>
    %7 = vector.broadcast %6 : vector<16x1xf32> to vector<16x32xf32>
    %8 = arith.subf %0, %7 : vector<16x32xf32>
    %9 = arith.mulf %8, %8 : vector<16x32xf32>
    %cst_6 = arith.constant dense<0.000000e+00> : vector<16xf32>
    %10 = vector.multi_reduction <add>, %9, %cst_6 [1] : vector<16x32xf32> to vector<16xf32>
    %11 = vector.shape_cast %10 : vector<16xf32> to vector<16x1xf32>
    %cst_7 = arith.constant 3.200000e+01 : f32
    %12 = vector.broadcast %cst_7 : f32 to vector<16x1xf32>
    %13 = arith.divf %11, %12 : vector<16x1xf32>
    %14 = vector.broadcast %6 : vector<16x1xf32> to vector<16x32xf32>
    %15 = arith.subf %0, %14 : vector<16x32xf32>
    %cst_8 = arith.constant 9.99999996E-13 : f32
    %16 = vector.broadcast %cst_8 : f32 to vector<16x1xf32>
    %17 = arith.addf %13, %16 : vector<16x1xf32>
    %18 = math.rsqrt %17 : vector<16x1xf32>
    %19 = vector.broadcast %18 : vector<16x1xf32> to vector<16x32xf32>
    %20 = arith.mulf %15, %19 : vector<16x32xf32>
    %21 = vector.broadcast %1 : vector<1x32xf32> to vector<16x32xf32>
    %22 = arith.mulf %20, %21 : vector<16x32xf32>
    %23 = vector.broadcast %2 : vector<1x32xf32> to vector<16x32xf32>
    %24 = arith.addf %22, %23 : vector<16x32xf32>
    %25 = arith.truncf %24 : vector<16x32xf32> to vector<16x32xbf16>
    %c0_9 = arith.constant 0 : index
    %c0_10 = arith.constant 0 : index
    %26 = vector.load %arg4[%c0_9, %c0_10] : memref<16x32xbf16, #tpu.memory_space<vmem>>, vector<16x32xbf16>
    tpu.vector_store %arg4[%c0_9, %c0_10], %25 {strides = array<i32>} : memref<16x32xbf16, #tpu.memory_space<vmem>>, vector<16x32xbf16>,
    return
  }
  func.func @transform_0(%arg0: i32) -> (i32, i32) {
    %c0_i32 = arith.constant 0 : i32
    %c0_i32_0 = arith.constant 0 : i32
    return %arg0, %c0_i32 : i32, i32
  }
  func.func @transform_1(%arg0: i32) -> (i32, i32) {
    %c0_i32 = arith.constant 0 : i32
    %c0_i32_0 = arith.constant 0 : i32
    %c0_i32_1 = arith.constant 0 : i32
    return %c0_i32, %c0_i32_0 : i32, i32
  }
  func.func @transform_2(%arg0: i32) -> (i32, i32) {
    %c0_i32 = arith.constant 0 : i32
    %c0_i32_0 = arith.constant 0 : i32
    %c0_i32_1 = arith.constant 0 : i32
    return %c0_i32, %c0_i32_0 : i32, i32
  }
  func.func @transform_3(%arg0: i32) -> (i32, i32) {
    %c0_i32 = arith.constant 0 : i32
    %c0_i32_0 = arith.constant 0 : i32
    return %arg0, %c0_i32 : i32, i32
  }
}

module attributes {stable_mosaic.version = 11 : i64} {
  func.func @_attn_block_kernel(%arg0: i32, %arg1: memref<8x32xbf16, #tpu.memory_space<vmem>>, %arg2: memref<32x96xbf16, #tpu.memory_space<vmem>>, %arg3: memref<1x96xf32, #tpu.memory_space<vmem>>, %arg4: memref<32x32xbf16, #tpu.memory_space<vmem>>, %arg5: memref<1x32xf32, #tpu.memory_space<vmem>>, %arg6: memref<1x32xf32, #tpu.memory_space<vmem>>, %arg7: memref<1x32xf32, #tpu.memory_space<vmem>>, %arg8: memref<8x32xbf16, #tpu.memory_space<vmem>>, %arg9: memref<8x96xf32, #tpu.memory_space<vmem>>) attributes {dimension_semantics = [#tpu.dimension_semantics<parallel>], iteration_bounds = array<i64: 2>, scalar_prefetch = 0 : i64, scratch_operands = 1 : i64, tpu.core_type = #tpu.core_type<tc>, window_params = [{transform_indices = @transform_0, window_bounds = array<i64: 8, 32>}, {pipeline_mode = #tpu.pipeline_mode<synchronous>, transform_indices = @transform_1, window_bounds = array<i64: 32, 96>}, {pipeline_mode = #tpu.pipeline_mode<synchronous>, transform_indices = @transform_2, window_bounds = array<i64: 1, 96>}, {pipeline_mode = #tpu.pipeline_mode<synchronous>, transform_indices = @transform_3, window_bounds = array<i64: 32, 32>}, {pipeline_mode = #tpu.pipeline_mode<synchronous>, transform_indices = @transform_4, window_bounds = array<i64: 1, 32>}, {pipeline_mode = #tpu.pipeline_mode<synchronous>, transform_indices = @transform_5, window_bounds = array<i64: 1, 32>}, {pipeline_mode = #tpu.pipeline_mode<synchronous>, transform_indices = @transform_6, window_bounds = array<i64: 1, 32>}, {transform_indices = @transform_7, window_bounds = array<i64: 8, 32>}]} {
    %c0 = arith.constant 0 : index
    %c0_0 = arith.constant 0 : index
    %0 = vector.load %arg1[%c0, %c0_0] : memref<8x32xbf16, #tpu.memory_space<vmem>>, vector<8x32xbf16>
    %c0_1 = arith.constant 0 : index
    %c0_2 = arith.constant 0 : index
    %1 = vector.load %arg2[%c0_1, %c0_2] : memref<32x96xbf16, #tpu.memory_space<vmem>>, vector<32x96xbf16>
    %cst = arith.constant dense<0.000000e+00> : vector<8x96xf32>
    %2 = tpu.matmul %0, %1, %cst {dimension_numbers = #tpu.dot_dimension_numbers<[1], [0], [0], [1], [0, 0, 1, 1], [], []>} : vector<8x32xbf16>, vector<32x96xbf16>, vector<8x96xf32> -> vector<8x96xf32>
    %c0_3 = arith.constant 0 : index
    %c0_4 = arith.constant 0 : index
    %3 = vector.load %arg3[%c0_3, %c0_4] : memref<1x96xf32, #tpu.memory_space<vmem>>, vector<1x96xf32>
    %4 = vector.broadcast %3 : vector<1x96xf32> to vector<8x96xf32>
    %5 = arith.addf %2, %4 : vector<8x96xf32>
    %c0_5 = arith.constant 0 : index
    %c0_6 = arith.constant 0 : index
    %6 = vector.load %arg9[%c0_5, %c0_6] : memref<8x96xf32, #tpu.memory_space<vmem>>, vector<8x96xf32>
    tpu.vector_store %arg9[%c0_5, %c0_6], %5 {strides = array<i32>} : memref<8x96xf32, #tpu.memory_space<vmem>>, vector<8x96xf32>,
    %c0_7 = arith.constant 0 : index
    %c0_8 = arith.constant 0 : index
    %7 = vector.load %arg9[%c0_7, %c0_8] : memref<8x96xf32, #tpu.memory_space<vmem>>, vector<8x8xf32>
    %8 = arith.truncf %7 : vector<8x8xf32> to vector<8x8xbf16>
    %c0_9 = arith.constant 0 : index
    %c32 = arith.constant 32 : index
    %9 = vector.load %arg9[%c0_9, %c32] : memref<8x96xf32, #tpu.memory_space<vmem>>, vector<8x8xf32>
    %10 = arith.truncf %9 : vector<8x8xf32> to vector<8x8xbf16>
    %c0_10 = arith.constant 0 : index
    %c64 = arith.constant 64 : index
    %11 = vector.load %arg9[%c0_10, %c64] : memref<8x96xf32, #tpu.memory_space<vmem>>, vector<8x8xf32>
    %12 = arith.truncf %11 : vector<8x8xf32> to vector<8x8xbf16>
    %13 = tpu.transpose %10, [1, 0] : vector<8x8xbf16> -> vector<8x8xbf16>
    %cst_11 = arith.constant dense<0.000000e+00> : vector<8x8xf32>
    %14 = tpu.matmul %8, %13, %cst_11 {dimension_numbers = #tpu.dot_dimension_numbers<[1], [0], [0], [1], [0, 0, 1, 1], [], []>} : vector<8x8xbf16>, vector<8x8xbf16>, vector<8x8xf32> -> vector<8x8xf32>
    %cst_12 = arith.constant 0.353553385 : f32
    %15 = vector.broadcast %cst_12 : f32 to vector<8x8xf32>
    %16 = arith.mulf %14, %15 : vector<8x8xf32>
    %cst_13 = arith.constant dense<0xFF800000> : vector<8xf32>
    %17 = vector.multi_reduction <maximumf>, %16, %cst_13 [1] : vector<8x8xf32> to vector<8xf32>
    %18 = vector.shape_cast %17 : vector<8xf32> to vector<8x1xf32>
    %19 = vector.broadcast %18 : vector<8x1xf32> to vector<8x8xf32>
    %20 = arith.subf %16, %19 : vector<8x8xf32>
    %21 = math.exp %20 : vector<8x8xf32>
    %cst_14 = arith.constant dense<0.000000e+00> : vector<8xf32>
    %22 = vector.multi_reduction <add>, %21, %cst_14 [1] : vector<8x8xf32> to vector<8xf32>
    %23 = vector.shape_cast %22 : vector<8xf32> to vector<8x1xf32>
    %24 = tpu.reciprocal %23 {approx = true} : vector<8x1xf32> -> vector<8x1xf32>
    %25 = vector.broadcast %24 : vector<8x1xf32> to vector<8x8xf32>
    %26 = arith.mulf %21, %25 : vector<8x8xf32>
    %27 = arith.truncf %26 : vector<8x8xf32> to vector<8x8xbf16>
    %cst_15 = arith.constant dense<0.000000e+00> : vector<8x8xf32>
    %28 = tpu.matmul %27, %12, %cst_15 {dimension_numbers = #tpu.dot_dimension_numbers<[1], [0], [0], [1], [0, 0, 1, 1], [], []>} : vector<8x8xbf16>, vector<8x8xbf16>, vector<8x8xf32> -> vector<8x8xf32>
    %c0_16 = arith.constant 0 : index
    %c8 = arith.constant 8 : index
    %29 = vector.load %arg9[%c0_16, %c8] : memref<8x96xf32, #tpu.memory_space<vmem>>, vector<8x8xf32>
    %30 = arith.truncf %29 : vector<8x8xf32> to vector<8x8xbf16>
    %c0_17 = arith.constant 0 : index
    %c40 = arith.constant 40 : index
    %31 = vector.load %arg9[%c0_17, %c40] : memref<8x96xf32, #tpu.memory_space<vmem>>, vector<8x8xf32>
    %32 = arith.truncf %31 : vector<8x8xf32> to vector<8x8xbf16>
    %c0_18 = arith.constant 0 : index
    %c72 = arith.constant 72 : index
    %33 = vector.load %arg9[%c0_18, %c72] : memref<8x96xf32, #tpu.memory_space<vmem>>, vector<8x8xf32>
    %34 = arith.truncf %33 : vector<8x8xf32> to vector<8x8xbf16>
    %35 = tpu.transpose %32, [1, 0] : vector<8x8xbf16> -> vector<8x8xbf16>
    %cst_19 = arith.constant dense<0.000000e+00> : vector<8x8xf32>
    %36 = tpu.matmul %30, %35, %cst_19 {dimension_numbers = #tpu.dot_dimension_numbers<[1], [0], [0], [1], [0, 0, 1, 1], [], []>} : vector<8x8xbf16>, vector<8x8xbf16>, vector<8x8xf32> -> vector<8x8xf32>
    %cst_20 = arith.constant 0.353553385 : f32
    %37 = vector.broadcast %cst_20 : f32 to vector<8x8xf32>
    %38 = arith.mulf %36, %37 : vector<8x8xf32>
    %cst_21 = arith.constant dense<0xFF800000> : vector<8xf32>
    %39 = vector.multi_reduction <maximumf>, %38, %cst_21 [1] : vector<8x8xf32> to vector<8xf32>
    %40 = vector.shape_cast %39 : vector<8xf32> to vector<8x1xf32>
    %41 = vector.broadcast %40 : vector<8x1xf32> to vector<8x8xf32>
    %42 = arith.subf %38, %41 : vector<8x8xf32>
    %43 = math.exp %42 : vector<8x8xf32>
    %cst_22 = arith.constant dense<0.000000e+00> : vector<8xf32>
    %44 = vector.multi_reduction <add>, %43, %cst_22 [1] : vector<8x8xf32> to vector<8xf32>
    %45 = vector.shape_cast %44 : vector<8xf32> to vector<8x1xf32>
    %46 = tpu.reciprocal %45 {approx = true} : vector<8x1xf32> -> vector<8x1xf32>
    %47 = vector.broadcast %46 : vector<8x1xf32> to vector<8x8xf32>
    %48 = arith.mulf %43, %47 : vector<8x8xf32>
    %49 = arith.truncf %48 : vector<8x8xf32> to vector<8x8xbf16>
    %cst_23 = arith.constant dense<0.000000e+00> : vector<8x8xf32>
    %50 = tpu.matmul %49, %34, %cst_23 {dimension_numbers = #tpu.dot_dimension_numbers<[1], [0], [0], [1], [0, 0, 1, 1], [], []>} : vector<8x8xbf16>, vector<8x8xbf16>, vector<8x8xf32> -> vector<8x8xf32>
    %c0_24 = arith.constant 0 : index
    %c16 = arith.constant 16 : index
    %51 = vector.load %arg9[%c0_24, %c16] : memref<8x96xf32, #tpu.memory_space<vmem>>, vector<8x8xf32>
    %52 = arith.truncf %51 : vector<8x8xf32> to vector<8x8xbf16>
    %c0_25 = arith.constant 0 : index
    %c48 = arith.constant 48 : index
    %53 = vector.load %arg9[%c0_25, %c48] : memref<8x96xf32, #tpu.memory_space<vmem>>, vector<8x8xf32>
    %54 = arith.truncf %53 : vector<8x8xf32> to vector<8x8xbf16>
    %c0_26 = arith.constant 0 : index
    %c80 = arith.constant 80 : index
    %55 = vector.load %arg9[%c0_26, %c80] : memref<8x96xf32, #tpu.memory_space<vmem>>, vector<8x8xf32>
    %56 = arith.truncf %55 : vector<8x8xf32> to vector<8x8xbf16>
    %57 = tpu.transpose %54, [1, 0] : vector<8x8xbf16> -> vector<8x8xbf16>
    %cst_27 = arith.constant dense<0.000000e+00> : vector<8x8xf32>
    %58 = tpu.matmul %52, %57, %cst_27 {dimension_numbers = #tpu.dot_dimension_numbers<[1], [0], [0], [1], [0, 0, 1, 1], [], []>} : vector<8x8xbf16>, vector<8x8xbf16>, vector<8x8xf32> -> vector<8x8xf32>
    %cst_28 = arith.constant 0.353553385 : f32
    %59 = vector.broadcast %cst_28 : f32 to vector<8x8xf32>
    %60 = arith.mulf %58, %59 : vector<8x8xf32>
    %cst_29 = arith.constant dense<0xFF800000> : vector<8xf32>
    %61 = vector.multi_reduction <maximumf>, %60, %cst_29 [1] : vector<8x8xf32> to vector<8xf32>
    %62 = vector.shape_cast %61 : vector<8xf32> to vector<8x1xf32>
    %63 = vector.broadcast %62 : vector<8x1xf32> to vector<8x8xf32>
    %64 = arith.subf %60, %63 : vector<8x8xf32>
    %65 = math.exp %64 : vector<8x8xf32>
    %cst_30 = arith.constant dense<0.000000e+00> : vector<8xf32>
    %66 = vector.multi_reduction <add>, %65, %cst_30 [1] : vector<8x8xf32> to vector<8xf32>
    %67 = vector.shape_cast %66 : vector<8xf32> to vector<8x1xf32>
    %68 = tpu.reciprocal %67 {approx = true} : vector<8x1xf32> -> vector<8x1xf32>
    %69 = vector.broadcast %68 : vector<8x1xf32> to vector<8x8xf32>
    %70 = arith.mulf %65, %69 : vector<8x8xf32>
    %71 = arith.truncf %70 : vector<8x8xf32> to vector<8x8xbf16>
    %cst_31 = arith.constant dense<0.000000e+00> : vector<8x8xf32>
    %72 = tpu.matmul %71, %56, %cst_31 {dimension_numbers = #tpu.dot_dimension_numbers<[1], [0], [0], [1], [0, 0, 1, 1], [], []>} : vector<8x8xbf16>, vector<8x8xbf16>, vector<8x8xf32> -> vector<8x8xf32>
    %c0_32 = arith.constant 0 : index
    %c24 = arith.constant 24 : index
    %73 = vector.load %arg9[%c0_32, %c24] : memref<8x96xf32, #tpu.memory_space<vmem>>, vector<8x8xf32>
    %74 = arith.truncf %73 : vector<8x8xf32> to vector<8x8xbf16>
    %c0_33 = arith.constant 0 : index
    %c56 = arith.constant 56 : index
    %75 = vector.load %arg9[%c0_33, %c56] : memref<8x96xf32, #tpu.memory_space<vmem>>, vector<8x8xf32>
    %76 = arith.truncf %75 : vector<8x8xf32> to vector<8x8xbf16>
    %c0_34 = arith.constant 0 : index
    %c88 = arith.constant 88 : index
    %77 = vector.load %arg9[%c0_34, %c88] : memref<8x96xf32, #tpu.memory_space<vmem>>, vector<8x8xf32>
    %78 = arith.truncf %77 : vector<8x8xf32> to vector<8x8xbf16>
    %79 = tpu.transpose %76, [1, 0] : vector<8x8xbf16> -> vector<8x8xbf16>
    %cst_35 = arith.constant dense<0.000000e+00> : vector<8x8xf32>
    %80 = tpu.matmul %74, %79, %cst_35 {dimension_numbers = #tpu.dot_dimension_numbers<[1], [0], [0], [1], [0, 0, 1, 1], [], []>} : vector<8x8xbf16>, vector<8x8xbf16>, vector<8x8xf32> -> vector<8x8xf32>
    %cst_36 = arith.constant 0.353553385 : f32
    %81 = vector.broadcast %cst_36 : f32 to vector<8x8xf32>
    %82 = arith.mulf %80, %81 : vector<8x8xf32>
    %cst_37 = arith.constant dense<0xFF800000> : vector<8xf32>
    %83 = vector.multi_reduction <maximumf>, %82, %cst_37 [1] : vector<8x8xf32> to vector<8xf32>
    %84 = vector.shape_cast %83 : vector<8xf32> to vector<8x1xf32>
    %85 = vector.broadcast %84 : vector<8x1xf32> to vector<8x8xf32>
    %86 = arith.subf %82, %85 : vector<8x8xf32>
    %87 = math.exp %86 : vector<8x8xf32>
    %cst_38 = arith.constant dense<0.000000e+00> : vector<8xf32>
    %88 = vector.multi_reduction <add>, %87, %cst_38 [1] : vector<8x8xf32> to vector<8xf32>
    %89 = vector.shape_cast %88 : vector<8xf32> to vector<8x1xf32>
    %90 = tpu.reciprocal %89 {approx = true} : vector<8x1xf32> -> vector<8x1xf32>
    %91 = vector.broadcast %90 : vector<8x1xf32> to vector<8x8xf32>
    %92 = arith.mulf %87, %91 : vector<8x8xf32>
    %93 = arith.truncf %92 : vector<8x8xf32> to vector<8x8xbf16>
    %cst_39 = arith.constant dense<0.000000e+00> : vector<8x8xf32>
    %94 = tpu.matmul %93, %78, %cst_39 {dimension_numbers = #tpu.dot_dimension_numbers<[1], [0], [0], [1], [0, 0, 1, 1], [], []>} : vector<8x8xbf16>, vector<8x8xbf16>, vector<8x8xf32> -> vector<8x8xf32>
    %95 = tpu.concatenate %28, %50, %72, %94 in 1 : vector<8x8xf32>, vector<8x8xf32>, vector<8x8xf32>, vector<8x8xf32> -> vector<8x32xf32>
    %96 = arith.truncf %95 : vector<8x32xf32> to vector<8x32xbf16>
    %c0_40 = arith.constant 0 : index
    %c0_41 = arith.constant 0 : index
    %97 = vector.load %arg4[%c0_40, %c0_41] : memref<32x32xbf16, #tpu.memory_space<vmem>>, vector<32x32xbf16>
    %cst_42 = arith.constant dense<0.000000e+00> : vector<8x32xf32>
    %98 = tpu.matmul %96, %97, %cst_42 {dimension_numbers = #tpu.dot_dimension_numbers<[1], [0], [0], [1], [0, 0, 1, 1], [], []>} : vector<8x32xbf16>, vector<32x32xbf16>, vector<8x32xf32> -> vector<8x32xf32>
    %c0_43 = arith.constant 0 : index
    %c0_44 = arith.constant 0 : index
    %99 = vector.load %arg5[%c0_43, %c0_44] : memref<1x32xf32, #tpu.memory_space<vmem>>, vector<1x32xf32>
    %100 = vector.broadcast %99 : vector<1x32xf32> to vector<8x32xf32>
    %101 = arith.addf %98, %100 : vector<8x32xf32>
    %102 = arith.extf %0 : vector<8x32xbf16> to vector<8x32xf32>
    %103 = arith.addf %101, %102 : vector<8x32xf32>
    %c0_45 = arith.constant 0 : index
    %c0_46 = arith.constant 0 : index
    %104 = vector.load %arg6[%c0_45, %c0_46] : memref<1x32xf32, #tpu.memory_space<vmem>>, vector<1x32xf32>
    %c0_47 = arith.constant 0 : index
    %c0_48 = arith.constant 0 : index
    %105 = vector.load %arg7[%c0_47, %c0_48] : memref<1x32xf32, #tpu.memory_space<vmem>>, vector<1x32xf32>
    %cst_49 = arith.constant dense<0.000000e+00> : vector<8xf32>
    %106 = vector.multi_reduction <add>, %103, %cst_49 [1] : vector<8x32xf32> to vector<8xf32>
    %107 = vector.shape_cast %106 : vector<8xf32> to vector<8x1xf32>
    %cst_50 = arith.constant 3.200000e+01 : f32
    %108 = vector.broadcast %cst_50 : f32 to vector<8x1xf32>
    %109 = arith.divf %107, %108 : vector<8x1xf32>
    %110 = vector.broadcast %109 : vector<8x1xf32> to vector<8x32xf32>
    %111 = arith.subf %103, %110 : vector<8x32xf32>
    %112 = arith.mulf %111, %111 : vector<8x32xf32>
    %cst_51 = arith.constant dense<0.000000e+00> : vector<8xf32>
    %113 = vector.multi_reduction <add>, %112, %cst_51 [1] : vector<8x32xf32> to vector<8xf32>
    %114 = vector.shape_cast %113 : vector<8xf32> to vector<8x1xf32>
    %cst_52 = arith.constant 3.200000e+01 : f32
    %115 = vector.broadcast %cst_52 : f32 to vector<8x1xf32>
    %116 = arith.divf %114, %115 : vector<8x1xf32>
    %117 = vector.broadcast %109 : vector<8x1xf32> to vector<8x32xf32>
    %118 = arith.subf %103, %117 : vector<8x32xf32>
    %cst_53 = arith.constant 9.99999996E-13 : f32
    %119 = vector.broadcast %cst_53 : f32 to vector<8x1xf32>
    %120 = arith.addf %116, %119 : vector<8x1xf32>
    %121 = math.rsqrt %120 : vector<8x1xf32>
    %122 = vector.broadcast %121 : vector<8x1xf32> to vector<8x32xf32>
    %123 = arith.mulf %118, %122 : vector<8x32xf32>
    %124 = vector.broadcast %104 : vector<1x32xf32> to vector<8x32xf32>
    %125 = arith.mulf %123, %124 : vector<8x32xf32>
    %126 = vector.broadcast %105 : vector<1x32xf32> to vector<8x32xf32>
    %127 = arith.addf %125, %126 : vector<8x32xf32>
    %128 = arith.truncf %127 : vector<8x32xf32> to vector<8x32xbf16>
    %c0_54 = arith.constant 0 : index
    %c0_55 = arith.constant 0 : index
    %129 = vector.load %arg8[%c0_54, %c0_55] : memref<8x32xbf16, #tpu.memory_space<vmem>>, vector<8x32xbf16>
    tpu.vector_store %arg8[%c0_54, %c0_55], %128 {strides = array<i32>} : memref<8x32xbf16, #tpu.memory_space<vmem>>, vector<8x32xbf16>,
    return
  }
  func.func @transform_0(%arg0: i32) -> (i32, i32) {
    %c0_i32 = arith.constant 0 : i32
    %c0_i32_0 = arith.constant 0 : i32
    return %arg0, %c0_i32 : i32, i32
  }
  func.func @transform_1(%arg0: i32) -> (i32, i32) {
    %c0_i32 = arith.constant 0 : i32
    %c0_i32_0 = arith.constant 0 : i32
    %c0_i32_1 = arith.constant 0 : i32
    return %c0_i32, %c0_i32_0 : i32, i32
  }
  func.func @transform_2(%arg0: i32) -> (i32, i32) {
    %c0_i32 = arith.constant 0 : i32
    %c0_i32_0 = arith.constant 0 : i32
    %c0_i32_1 = arith.constant 0 : i32
    return %c0_i32, %c0_i32_0 : i32, i32
  }
  func.func @transform_3(%arg0: i32) -> (i32, i32) {
    %c0_i32 = arith.constant 0 : i32
    %c0_i32_0 = arith.constant 0 : i32
    %c0_i32_1 = arith.constant 0 : i32
    return %c0_i32, %c0_i32_0 : i32, i32
  }
  func.func @transform_4(%arg0: i32) -> (i32, i32) {
    %c0_i32 = arith.constant 0 : i32
    %c0_i32_0 = arith.constant 0 : i32
    %c0_i32_1 = arith.constant 0 : i32
    return %c0_i32, %c0_i32_0 : i32, i32
  }
  func.func @transform_5(%arg0: i32) -> (i32, i32) {
    %c0_i32 = arith.constant 0 : i32
    %c0_i32_0 = arith.constant 0 : i32
    %c0_i32_1 = arith.constant 0 : i32
    return %c0_i32, %c0_i32_0 : i32, i32
  }
  func.func @transform_6(%arg0: i32) -> (i32, i32) {
    %c0_i32 = arith.constant 0 : i32
    %c0_i32_0 = arith.constant 0 : i32
    %c0_i32_1 = arith.constant 0 : i32
    return %c0_i32, %c0_i32_0 : i32, i32
  }
  func.func @transform_7(%arg0: i32) -> (i32, i32) {
    %c0_i32 = arith.constant 0 : i32
    %c0_i32_0 = arith.constant 0 : i32
    return %arg0, %c0_i32 : i32, i32
  }
}

module attributes {stable_mosaic.version = 11 : i64} {
  func.func @_ffn_block_kernel(%arg0: i32, %arg1: i32, %arg2: memref<16x32xbf16, #tpu.memory_space<vmem>>, %arg3: memref<32x64xbf16, #tpu.memory_space<vmem>>, %arg4: memref<1x64xf32, #tpu.memory_space<vmem>>, %arg5: memref<64x32xbf16, #tpu.memory_space<vmem>>, %arg6: memref<1x32xf32, #tpu.memory_space<vmem>>, %arg7: memref<1x32xf32, #tpu.memory_space<vmem>>, %arg8: memref<1x32xf32, #tpu.memory_space<vmem>>, %arg9: memref<16x32xbf16, #tpu.memory_space<vmem>>, %arg10: memref<16x32xf32, #tpu.memory_space<vmem>>) attributes {dimension_semantics = [#tpu.dimension_semantics<parallel>, #tpu.dimension_semantics<arbitrary>], iteration_bounds = array<i64: 1, 1>, scalar_prefetch = 0 : i64, scratch_operands = 1 : i64, tpu.core_type = #tpu.core_type<tc>, window_params = [{transform_indices = @transform_0, window_bounds = array<i64: 16, 32>}, {transform_indices = @transform_1, window_bounds = array<i64: 32, 64>}, {transform_indices = @transform_2, window_bounds = array<i64: 1, 64>}, {transform_indices = @transform_3, window_bounds = array<i64: 64, 32>}, {pipeline_mode = #tpu.pipeline_mode<synchronous>, transform_indices = @transform_4, window_bounds = array<i64: 1, 32>}, {pipeline_mode = #tpu.pipeline_mode<synchronous>, transform_indices = @transform_5, window_bounds = array<i64: 1, 32>}, {pipeline_mode = #tpu.pipeline_mode<synchronous>, transform_indices = @transform_6, window_bounds = array<i64: 1, 32>}, {transform_indices = @transform_7, window_bounds = array<i64: 16, 32>}]} {
    %c0_i32 = arith.constant 0 : i32
    %0 = arith.cmpi eq, %arg1, %c0_i32 : i32
    %1 = arith.extui %0 : i1 to i32
    %c0_i32_0 = arith.constant 0 : i32
    %2 = arith.cmpi ne, %1, %c0_i32_0 : i32
    scf.if %2 {
      %cst_19 = arith.constant 0.000000e+00 : f32
      %31 = vector.broadcast %cst_19 : f32 to vector<16x32xf32>
      %c0_20 = arith.constant 0 : index
      %c0_21 = arith.constant 0 : index
      %32 = vector.load %arg10[%c0_20, %c0_21] : memref<16x32xf32, #tpu.memory_space<vmem>>, vector<16x32xf32>
      tpu.vector_store %arg10[%c0_20, %c0_21], %31 {strides = array<i32>} : memref<16x32xf32, #tpu.memory_space<vmem>>, vector<16x32xf32>,
    } else {
    }
    %c0 = arith.constant 0 : index
    %c0_1 = arith.constant 0 : index
    %3 = vector.load %arg2[%c0, %c0_1] : memref<16x32xbf16, #tpu.memory_space<vmem>>, vector<16x32xbf16>
    %c0_2 = arith.constant 0 : index
    %c0_3 = arith.constant 0 : index
    %4 = vector.load %arg3[%c0_2, %c0_3] : memref<32x64xbf16, #tpu.memory_space<vmem>>, vector<32x64xbf16>
    %cst = arith.constant dense<0.000000e+00> : vector<16x64xf32>
    %5 = tpu.matmul %3, %4, %cst {dimension_numbers = #tpu.dot_dimension_numbers<[1], [0], [0], [1], [0, 0, 1, 1], [], []>} : vector<16x32xbf16>, vector<32x64xbf16>, vector<16x64xf32> -> vector<16x64xf32>
    %c0_4 = arith.constant 0 : index
    %c0_5 = arith.constant 0 : index
    %6 = vector.load %arg4[%c0_4, %c0_5] : memref<1x64xf32, #tpu.memory_space<vmem>>, vector<1x64xf32>
    %7 = vector.broadcast %6 : vector<1x64xf32> to vector<16x64xf32>
    %8 = arith.addf %5, %7 : vector<16x64xf32>
    %cst_6 = arith.constant 5.000000e-01 : f32
    %9 = vector.broadcast %cst_6 : f32 to vector<16x64xf32>
    %10 = arith.mulf %9, %8 : vector<16x64xf32>
    %cst_7 = arith.constant 4.471500e-02 : f32
    %11 = vector.broadcast %cst_7 : f32 to vector<16x64xf32>
    %12 = arith.mulf %11, %8 : vector<16x64xf32>
    %13 = arith.mulf %12, %8 : vector<16x64xf32>
    %14 = arith.mulf %13, %8 : vector<16x64xf32>
    %15 = arith.addf %8, %14 : vector<16x64xf32>
    %cst_8 = arith.constant 0.797884583 : f32
    %16 = vector.broadcast %cst_8 : f32 to vector<16x64xf32>
    %17 = arith.mulf %16, %15 : vector<16x64xf32>
    %18 = math.tanh %17 : vector<16x64xf32>
    %cst_9 = arith.constant 1.000000e+00 : f32
    %19 = vector.broadcast %cst_9 : f32 to vector<16x64xf32>
    %20 = arith.addf %19, %18 : vector<16x64xf32>
    %21 = arith.mulf %10, %20 : vector<16x64xf32>
    %c0_10 = arith.constant 0 : index
    %c0_11 = arith.constant 0 : index
    %22 = vector.load %arg10[%c0_10, %c0_11] : memref<16x32xf32, #tpu.memory_space<vmem>>, vector<16x32xf32>
    %23 = arith.truncf %21 : vector<16x64xf32> to vector<16x64xbf16>
    %c0_12 = arith.constant 0 : index
    %c0_13 = arith.constant 0 : index
    %24 = vector.load %arg5[%c0_12, %c0_13] : memref<64x32xbf16, #tpu.memory_space<vmem>>, vector<64x32xbf16>
    %cst_14 = arith.constant dense<0.000000e+00> : vector<16x32xf32>
    %25 = tpu.matmul %23, %24, %cst_14 {dimension_numbers = #tpu.dot_dimension_numbers<[1], [0], [0], [1], [0, 0, 1, 1], [], []>} : vector<16x64xbf16>, vector<64x32xbf16>, vector<16x32xf32> -> vector<16x32xf32>
    %26 = arith.addf %22, %25 : vector<16x32xf32>
    %c0_15 = arith.constant 0 : index
    %c0_16 = arith.constant 0 : index
    %27 = vector.load %arg10[%c0_15, %c0_16] : memref<16x32xf32, #tpu.memory_space<vmem>>, vector<16x32xf32>
    tpu.vector_store %arg10[%c0_15, %c0_16], %26 {strides = array<i32>} : memref<16x32xf32, #tpu.memory_space<vmem>>, vector<16x32xf32>,
    %c0_i32_17 = arith.constant 0 : i32
    %28 = arith.cmpi eq, %arg1, %c0_i32_17 : i32
    %29 = arith.extui %28 : i1 to i32
    %c0_i32_18 = arith.constant 0 : i32
    %30 = arith.cmpi ne, %29, %c0_i32_18 : i32
    scf.if %30 {
      %c0_19 = arith.constant 0 : index
      %c0_20 = arith.constant 0 : index
      %31 = vector.load %arg10[%c0_19, %c0_20] : memref<16x32xf32, #tpu.memory_space<vmem>>, vector<16x32xf32>
      %c0_21 = arith.constant 0 : index
      %c0_22 = arith.constant 0 : index
      %32 = vector.load %arg6[%c0_21, %c0_22] : memref<1x32xf32, #tpu.memory_space<vmem>>, vector<1x32xf32>
      %33 = vector.broadcast %32 : vector<1x32xf32> to vector<16x32xf32>
      %34 = arith.addf %31, %33 : vector<16x32xf32>
      %35 = arith.extf %3 : vector<16x32xbf16> to vector<16x32xf32>
      %36 = arith.addf %34, %35 : vector<16x32xf32>
      %c0_23 = arith.constant 0 : index
      %c0_24 = arith.constant 0 : index
      %37 = vector.load %arg7[%c0_23, %c0_24] : memref<1x32xf32, #tpu.memory_space<vmem>>, vector<1x32xf32>
      %c0_25 = arith.constant 0 : index
      %c0_26 = arith.constant 0 : index
      %38 = vector.load %arg8[%c0_25, %c0_26] : memref<1x32xf32, #tpu.memory_space<vmem>>, vector<1x32xf32>
      %cst_27 = arith.constant dense<0.000000e+00> : vector<16xf32>
      %39 = vector.multi_reduction <add>, %36, %cst_27 [1] : vector<16x32xf32> to vector<16xf32>
      %40 = vector.shape_cast %39 : vector<16xf32> to vector<16x1xf32>
      %cst_28 = arith.constant 3.200000e+01 : f32
      %41 = vector.broadcast %cst_28 : f32 to vector<16x1xf32>
      %42 = arith.divf %40, %41 : vector<16x1xf32>
      %43 = vector.broadcast %42 : vector<16x1xf32> to vector<16x32xf32>
      %44 = arith.subf %36, %43 : vector<16x32xf32>
      %45 = arith.mulf %44, %44 : vector<16x32xf32>
      %cst_29 = arith.constant dense<0.000000e+00> : vector<16xf32>
      %46 = vector.multi_reduction <add>, %45, %cst_29 [1] : vector<16x32xf32> to vector<16xf32>
      %47 = vector.shape_cast %46 : vector<16xf32> to vector<16x1xf32>
      %cst_30 = arith.constant 3.200000e+01 : f32
      %48 = vector.broadcast %cst_30 : f32 to vector<16x1xf32>
      %49 = arith.divf %47, %48 : vector<16x1xf32>
      %50 = vector.broadcast %42 : vector<16x1xf32> to vector<16x32xf32>
      %51 = arith.subf %36, %50 : vector<16x32xf32>
      %cst_31 = arith.constant 9.99999996E-13 : f32
      %52 = vector.broadcast %cst_31 : f32 to vector<16x1xf32>
      %53 = arith.addf %49, %52 : vector<16x1xf32>
      %54 = math.rsqrt %53 : vector<16x1xf32>
      %55 = vector.broadcast %54 : vector<16x1xf32> to vector<16x32xf32>
      %56 = arith.mulf %51, %55 : vector<16x32xf32>
      %57 = vector.broadcast %37 : vector<1x32xf32> to vector<16x32xf32>
      %58 = arith.mulf %56, %57 : vector<16x32xf32>
      %59 = vector.broadcast %38 : vector<1x32xf32> to vector<16x32xf32>
      %60 = arith.addf %58, %59 : vector<16x32xf32>
      %61 = arith.truncf %60 : vector<16x32xf32> to vector<16x32xbf16>
      %c0_32 = arith.constant 0 : index
      %c0_33 = arith.constant 0 : index
      %62 = vector.load %arg9[%c0_32, %c0_33] : memref<16x32xbf16, #tpu.memory_space<vmem>>, vector<16x32xbf16>
      tpu.vector_store %arg9[%c0_32, %c0_33], %61 {strides = array<i32>} : memref<16x32xbf16, #tpu.memory_space<vmem>>, vector<16x32xbf16>,
    } else {
    }
    return
  }
  func.func @transform_0(%arg0: i32, %arg1: i32) -> (i32, i32) {
    %c0_i32 = arith.constant 0 : i32
    %c0_i32_0 = arith.constant 0 : i32
    return %arg0, %c0_i32 : i32, i32
  }
  func.func @transform_1(%arg0: i32, %arg1: i32) -> (i32, i32) {
    %c0_i32 = arith.constant 0 : i32
    %c0_i32_0 = arith.constant 0 : i32
    return %c0_i32, %arg1 : i32, i32
  }
  func.func @transform_2(%arg0: i32, %arg1: i32) -> (i32, i32) {
    %c0_i32 = arith.constant 0 : i32
    %c0_i32_0 = arith.constant 0 : i32
    return %c0_i32, %arg1 : i32, i32
  }
  func.func @transform_3(%arg0: i32, %arg1: i32) -> (i32, i32) {
    %c0_i32 = arith.constant 0 : i32
    %c0_i32_0 = arith.constant 0 : i32
    return %arg1, %c0_i32 : i32, i32
  }
  func.func @transform_4(%arg0: i32, %arg1: i32) -> (i32, i32) {
    %c0_i32 = arith.constant 0 : i32
    %c0_i32_0 = arith.constant 0 : i32
    %c0_i32_1 = arith.constant 0 : i32
    return %c0_i32, %c0_i32_0 : i32, i32
  }
  func.func @transform_5(%arg0: i32, %arg1: i32) -> (i32, i32) {
    %c0_i32 = arith.constant 0 : i32
    %c0_i32_0 = arith.constant 0 : i32
    %c0_i32_1 = arith.constant 0 : i32
    return %c0_i32, %c0_i32_0 : i32, i32
  }
  func.func @transform_6(%arg0: i32, %arg1: i32) -> (i32, i32) {
    %c0_i32 = arith.constant 0 : i32
    %c0_i32_0 = arith.constant 0 : i32
    %c0_i32_1 = arith.constant 0 : i32
    return %c0_i32, %c0_i32_0 : i32, i32
  }
  func.func @transform_7(%arg0: i32, %arg1: i32) -> (i32, i32) {
    %c0_i32 = arith.constant 0 : i32
    %c0_i32_0 = arith.constant 0 : i32
    return %arg0, %c0_i32 : i32, i32
  }
}

module attributes {stable_mosaic.version = 11 : i64} {
  func.func @_pooler_kernel(%arg0: memref<2x32xbf16, #tpu.memory_space<vmem>>, %arg1: memref<32x32xbf16, #tpu.memory_space<vmem>>, %arg2: memref<1x32xf32, #tpu.memory_space<vmem>>, %arg3: memref<2x32xbf16, #tpu.memory_space<vmem>>) attributes {dimension_semantics = [], scalar_prefetch = 0 : i64, scratch_operands = 0 : i64, tpu.core_type = #tpu.core_type<tc>} {
    %c0 = arith.constant 0 : index
    %c0_0 = arith.constant 0 : index
    %0 = vector.load %arg0[%c0, %c0_0] : memref<2x32xbf16, #tpu.memory_space<vmem>>, vector<2x32xbf16>
    %c0_1 = arith.constant 0 : index
    %c0_2 = arith.constant 0 : index
    %1 = vector.load %arg1[%c0_1, %c0_2] : memref<32x32xbf16, #tpu.memory_space<vmem>>, vector<32x32xbf16>
    %cst = arith.constant dense<0.000000e+00> : vector<2x32xf32>
    %2 = tpu.matmul %0, %1, %cst {dimension_numbers = #tpu.dot_dimension_numbers<[1], [0], [0], [1], [0, 0, 1, 1], [], []>} : vector<2x32xbf16>, vector<32x32xbf16>, vector<2x32xf32> -> vector<2x32xf32>
    %c0_3 = arith.constant 0 : index
    %c0_4 = arith.constant 0 : index
    %3 = vector.load %arg2[%c0_3, %c0_4] : memref<1x32xf32, #tpu.memory_space<vmem>>, vector<1x32xf32>
    %4 = vector.broadcast %3 : vector<1x32xf32> to vector<2x32xf32>
    %5 = arith.addf %2, %4 : vector<2x32xf32>
    %6 = math.tanh %5 : vector<2x32xf32>
    %7 = arith.truncf %6 : vector<2x32xf32> to vector<2x32xbf16>
    %c0_5 = arith.constant 0 : index
    %c0_6 = arith.constant 0 : index
    %8 = vector.load %arg3[%c0_5, %c0_6] : memref<2x32xbf16, #tpu.memory_space<vmem>>, vector<2x32xbf16>
    tpu.vector_store %arg3[%c0_5, %c0_6], %7 {strides = array<i32>} : memref<2x32xbf16, #tpu.memory_space<vmem>>, vector<2x32xbf16>,
    return
  }
}

</mosaic_0001>

<bundles_post_ra>
// kernel: bert_forward.6
= control target key start
LH: loop header
LB: loop body
LE: loop exit
PB: predicated region body
PF: predicated region fallthrough
CT: control target
= control target key end

     0   :  { %vm18_vm0 = vcmask 261120   ;;  %vm70_vm1 = vcmask 257024   ;;  %s129_s0 = inlined_call_operand.vmem [shape: f32[16,32], index: 0, kind: input, shape index: {}]   ;;  %s130_s1 = inlined_call_operand.vmem [shape: f32[1,32], index: 1, kind: input, shape index: {}]   ;;  %s131_s2 = inlined_call_operand.vmem [shape: f32[1,32], index: 2, kind: input, shape index: {}]   ;;  %s132_s3 = inlined_call_operand.vmem [shape: bf16[16,32], index: 3, kind: output, shape index: {}]  }
   0x1   :  { %v14_v0 = vld [vmem:[%s129_s0] sm:$0xff]  ;;  %v15_v1 = vld [vmem:[%s129_s0 + $0x8] sm:$0xff] }
   0x2   :  { %v19_v2 = vsel %vm18_vm0, %v14_v0, 0.0  ;;  %v22_v3 = vsel %vm18_vm0, %v15_v1, 0.0  ;;  %v77_v21 = vld [vmem:[%s130_s1] ss:$0 sm:$0xff] }
   0x3   :  { %20 = vadd.xlane.f32.xlu0 %v19_v2  ;;  %v78_v23 = vld [vmem:[%s131_s2] ss:$0 sm:$0xff] }
   0x7   :  { %23 = vadd.xlane.f32.xlu0 %v22_v3 }
  0x8c   :  { %v21_v4 = vpop.xlane.xlu0 %20 }
  0x8d   :  { %v26_v5 = vmul.f32 0.03125, %v21_v4 }
  0x8f   :  { %v28_v6 = vsub.f32 %v14_v0, %v26_v5 }
  0x90   :  { %v24_v7 = vpop.xlane.xlu0 %23 }
  0x91   :  { %v27_v8 = vmul.f32 0.03125, %v24_v7  ;;  %v30_v9 = vmul.f32 %v28_v6, %v28_v6 }
  0x93   :  { %v29_v10 = vsub.f32 %v15_v1, %v27_v8  ;;  %v32_v11 = vsel %vm18_vm0, %v30_v9, 0.0 }
  0x94   :  { %33 = vadd.xlane.f32.xlu1 %v32_v11 }
  0x95   :  { %v31_v12 = vmul.f32 %v29_v10, %v29_v10 }
  0x97   :  { %v35_v13 = vsel %vm18_vm0, %v31_v12, 0.0 }
  0x98   :  { %36 = vadd.xlane.f32.xlu1 %v35_v13 }
 0x11d   :  { %v34_v14 = vpop.xlane.xlu1 %33 }
 0x11e   :  { %v38_v15 = vmul.f32 0.03125, %v34_v14 }
 0x120   :  { %v40_v16 = vadd.f32 1e-12, %v38_v15 }
 0x121   :  { %v37_v17 = vpop.xlane.xlu1 %36 }
 0x122   :  { %83 = vrsqrt.f32 %v40_v16  ;;  %v39_v18 = vmul.f32 0.03125, %v37_v17 }
 0x124   :  { %v41_v19 = vadd.f32 1e-12, %v39_v18 }
 0x126   :  { %85 = vrsqrt.f32 %v41_v19 }
 0x12f   :  { %v84_v20 = vpop.eup %83 }
 0x130   :  { %v44_v22 = vmul.f32 %v84_v20, %v28_v6 }
 0x132   :  { %v52_v24 = vmul.f32 %v77_v21, %v44_v22 }
 0x133   :  { %v86_v25 = vpop.eup %85 }
 0x134   :  { %v60_v26 = vadd.f32 %v78_v23, %v52_v24  ;;  %v45_v27 = vmul.f32 %v86_v25, %v29_v10 }
 0x136   :  { %v81_v28 = vpack.c.bf16 %v60_v26, %v60_v26  ;;  %v53_v29 = vmul.f32 %v77_v21, %v45_v27 }
 0x138   :  { %71 = vst.msk [vmem:[%s132_s3] sm:$0xf] %vm70_vm1, %v81_v28  ;;  %v61_v30 = vadd.f32 %v78_v23, %v53_v29 }
 0x13a   :  { %v82_v31 = vpack.c.bf16 %v61_v30, %v61_v30 }
 0x13c   :  { %72 = vst.msk [vmem:[%s132_s3 + $0x4] sm:$0xf] %vm70_vm1, %v82_v31 }

// kernel: bert_forward.11
= control target key start
LH: loop header
LB: loop body
LE: loop exit
PB: predicated region body
PF: predicated region fallthrough
CT: control target
= control target key end

     0   :  { %v146_v1 = vmov 0.0   ;;  %vm147_vm0 = vmmov 0   ;;  %s184_s0 = inlined_call_operand.vmem [shape: bf16[2,32], index: 0, kind: input, shape index: {}]   ;;  %s185_s1 = inlined_call_operand.vmem [shape: bf16[32,32], index: 1, kind: input, shape index: {}]   ;;  %s186_s2 = inlined_call_operand.vmem [shape: f32[1,32], index: 2, kind: input, shape index: {}]   ;;  %s187_s3 = inlined_call_operand.hbm [shape: bf16[2,32], index: 3, kind: output, shape index: {}]  }
   0x1   :  { %v120_v0 = vld [vmem:[%s185_s1 + $0x8] sm:$0xff]   ;;  %109 = vmatprep.subr.bf16.mxu0 %v146_v1  ;;  %v121_v2 = vld [vmem:[%s185_s1] sm:$0xff]   ;;  %113 = vmatprep.mubr.msk.bf16.mxu0 %vm147_vm0, %v146_v1 }
   0x2   :  { %110 = vmatpush3.bf16.msra.mxu0 %v120_v0 }
   0x3   :  { %111 = vmatprep.subr.bf16.mxu0 %v146_v1 }
   0x4   :  { %8 = vsyncpa [#allocation3], 0  ;;  %v16_v3 = vld [vmem:[%s184_s0] sm:$0x1]  ;;  %vm40_vm1 = vcmask 261120   ;;  %s148_s1 = smov [#allocation2]  }
   0x5   :  { %v102_v4 = vld [vmem:[%s186_s2] ss:$0 sm:$0xff]  ;;  %s94_s20 = sshll.u32 %s148_s1, 4  ;;  %vm86_vm2 = vcmask 253952   ;;  %s95_s20 = int_to_ptr.vmem [resolvable:$true] %s94_s20 }
   0x6   :  { %112 = vmatpush3.bf16.msra.mxu0 %v121_v2  ;;  %s124_s0 = scalar_lea.vmem %s95_s20, 16  ;;  %s128_s21 = scalar_lea.vmem %s95_s20, 32 }
   0x7   :  { %p125_p0 = scmp.ne.s32.totalorder %s95_s20, %s124_s0  ;;  %p129_p1 = scmp.lt.s32.totalorder %s95_s20, %s95_s20 }
   0x8   :  { %p130_p2 = scmp.lt.s32.totalorder %s128_s21, %s124_s0 }
   0x9   :  { %114 = vmatmul.mubr.msk.bf16.vlgmr.msra.gmra.mxu0 %vm40_vm1, %v16_v3 }
   0xa   :  { %p131_p3 = por %p130_p2, %p129_p1 }
   0xc   :  { %p132_p4 = pnand %p131_p3, %p125_p0 }
  0xc9   :  { %v78_v5 = vpop.f32.mrf.mxu0 }
  0xca   :  { %v79_v6 = vadd.f32 %v102_v4, %v78_v5 }
  0xcb   :  { %v115_v7 = vpop.f32.mrf.mxu0 }
  0xcc   :  { %122 = vtanh.f32 %v79_v6 }
  0xcd   :  { %v81_v8 = vpop.f32.mrf.mxu0 }
  0xcf   :  { %v116_v9 = vpop.f32.mrf.mxu0 }
  0xd9   :  { %v123_v10 = vpop.eup %122 }
  0xda   :  { %v85_v11 = vpack.c.bf16 %v123_v10, %v123_v10 }
  0xdc   :  { %87 = vst.msk [vmem:[#allocation2] sm:$0x1] %vm86_vm2, %v85_v11 }
  0xdd   :  { %135 = shalt.err (!%p132_p4)
}
  0xde   :  { %97 = dma.vmem_to_hbm [thread:$0]  %s95_s20, 16, %s187_s3, [#allocation3]  }
  0xdf   :  { %144 = dma.done.wait [#allocation3], 16  }
  0xe0   :  { %145 = vsyncadd [#allocation3], 4294967280 }
  0xe1   :  { %101 = vsyncpa [#allocation3], 1 }

// kernel: bert_forward.8
= control target key start
LH: loop header
LB: loop body
LE: loop exit
PB: predicated region body
PF: predicated region fallthrough
CT: control target
= control target key end

     0   :  { %vm31_vm0 = vcmask 261120   ;;  %v352_v0 = vmov 0.0   ;;  %vm353_vm1 = vmmov 0   ;;  %vm162_vm2 = vcmask 523264   ;;  %s447_s1 = inlined_call_operand.vmem [shape: bf16[32,64], index: 1, kind: input, shape index: {}]   ;;  %s448_s0 = inlined_call_operand.vmem [shape: bf16[16,32], index: 0, kind: input, shape index: {}]   ;;  %s449_s3 = inlined_call_operand.vmem [shape: bf16[64,32], index: 3, kind: input, shape index: {}]   ;;  %s450_s2 = inlined_call_operand.vmem [shape: f32[1,64], index: 2, kind: input, shape index: {}]   ;;  %s451_s4 = inlined_call_operand.vmem [shape: f32[1,32], index: 4, kind: input, shape index: {}]   ;;  %s452_s5 = inlined_call_operand.vmem [shape: f32[1,32], index: 5, kind: input, shape index: {}]   ;;  %s453_s6 = inlined_call_operand.vmem [shape: f32[1,32], index: 6, kind: input, shape index: {}]   ;;  %s454_s7 = inlined_call_operand.vmem [shape: bf16[16,32], index: 7, kind: output, shape index: {}]  }
   0x1   :  { %314 = vmatprep.subr.bf16.mxu0 %v352_v0  ;;  %v336_v1 = vld [vmem:[%s447_s1 + $0x8] sm:$0xff]   ;;  %318 = vmatprep.mubr.msk.bf16.mxu0 %vm353_vm1, %v352_v0  ;;  %32 = vst.msk [vmem:[#allocation2] sm:$0xff] %vm31_vm0, %v352_v0  ;;  %33 = vst.msk [vmem:[#allocation2 + $0x8] sm:$0xff] %vm31_vm0, %v352_v0  ;;  %v337_v2 = vld [vmem:[%s447_s1] sm:$0xff]   ;;  %vm282_vm3 = vcmask 257024  }
   0x2   :  { %322 = vmatprep.subr.bf16.mxu1 %v352_v0  ;;  %330 = vmatprep.mubr.msk.bf16.mxu1 %vm353_vm1, %v352_v0  ;;  %v405_v3 = vld [vmem:[%s448_s0] sm:$0xff]   ;;  %v339_v4 = vld [vmem:[%s449_s3 + $0x18] sm:$0xff]   ;;  %v340_v5 = vld [vmem:[%s449_s3 + $0x10] sm:$0xff]  }
   0x3   :  { %315 = vmatpush3.bf16.msra.mxu0 %v336_v1  ;;  %323 = vmatpush3.bf16.msra.mxu1 %v339_v4  ;;  %v341_v6 = vld [vmem:[%s449_s3 + $0x8] sm:$0xff]   ;;  %v342_v7 = vld [vmem:[%s449_s3] sm:$0xff]   ;;  %v225_v43 = vunpack.c.l.bf16 %v405_v3  ;;  %v226_v47 = vunpack.c.h.bf16 %v405_v3 }
   0x4   :  { %316 = vmatprep.subr.bf16.mxu0 %v352_v0  ;;  %324 = vmatprep.subr.bf16.mxu1 %v352_v0  ;;  %v289_v8 = vld [vmem:[%s450_s2] ss:$0 sm:$0xff] }
   0x5   :  { %v299_v42 = vld [vmem:[%s451_s4] ss:$0 sm:$0xff] }
   0x7   :  { %317 = vmatpush3.bf16.msra.mxu0 %v337_v2  ;;  %325 = vmatpush3.bf16.msra.mxu1 %v340_v5 }
   0x8   :  { %326 = vmatprep.subr.bf16.mxu1 %v352_v0  ;;  %v127_v34 = vld [vmem:[#allocation2] sm:$0xff]  ;;  %v128_v38 = vld [vmem:[#allocation2 + $0x8] sm:$0xff] }
   0xa   :  { %319 = vmatmul.mubr.msk.bf16.vlgmr.msra.gmra.mxu0 %vm31_vm0, %v405_v3 }
   0xb   :  { %327 = vmatpush3.bf16.msra.mxu1 %v341_v6  ;;  %v300_v6 = vld [vmem:[%s452_s5] ss:$0 sm:$0xff] }
   0xc   :  { %328 = vmatprep.subr.bf16.mxu1 %v352_v0 }
   0xf   :  { %329 = vmatpush3.bf16.msra.mxu1 %v342_v7 }
  0xca   :  { %v102_v9 = vpop.f32.mrf.mxu0 }
  0xcb   :  { %v103_v10 = vadd.f32 %v289_v8, %v102_v9 }
  0xcc   :  { %v320_v11 = vpop.f32.mrf.mxu0 }
  0xcd   :  { %v111_v12 = vmul.f32 0.044715, %v103_v10  ;;  %v109_v28 = vmul.f32 0.5, %v103_v10 }
  0xce   :  { %v105_v13 = vpop.f32.mrf.mxu0 }
  0xcf   :  { %v113_v14 = vmul.f32 %v111_v12, %v103_v10  ;;  %v106_v15 = vadd.f32 %v289_v8, %v105_v13  ;;  %v301_v8 = vld [vmem:[%s453_s6] ss:$0 sm:$0xff] }
  0xd0   :  { %v321_v16 = vpop.f32.mrf.mxu0 }
  0xd1   :  { %v115_v17 = vmul.f32 %v113_v14, %v103_v10  ;;  %v112_v18 = vmul.f32 0.044715, %v106_v15  ;;  %v110_v29 = vmul.f32 0.5, %v106_v15 }
  0xd3   :  { %v117_v19 = vadd.f32 %v115_v17, %v103_v10  ;;  %v114_v20 = vmul.f32 %v112_v18, %v106_v15 }
  0xd5   :  { %v119_v21 = vmul.f32 0.7978846, %v117_v19  ;;  %v116_v22 = vmul.f32 %v114_v20, %v106_v15 }
  0xd7   :  { %344 = vtanh.f32 %v119_v21  ;;  %v118_v23 = vadd.f32 %v116_v22, %v106_v15 }
  0xd9   :  { %v120_v24 = vmul.f32 0.7978846, %v118_v23 }
  0xdb   :  { %346 = vtanh.f32 %v120_v24 }
  0xe4   :  { %v345_v25 = vpop.eup %344 }
  0xe5   :  { %v123_v26 = vadd.f32 1.0, %v345_v25 }
  0xe7   :  { %v125_v31 = vmul.f32 %v123_v26, %v109_v28 }
  0xe8   :  { %v347_v27 = vpop.eup %346 }
  0xe9   :  { %v124_v30 = vadd.f32 1.0, %v347_v27 }
  0xeb   :  { %v126_v32 = vmul.f32 %v124_v30, %v110_v29 }
  0xed   :  { %v129_v33 = vpack.c.bf16 %v126_v32, %v125_v31 }
  0xef   :  { %331 = vmatmul.mubr.msk.bf16.vlgmr.msra.gmra.mxu1 %vm162_vm2, %v129_v33 }
 0x1af   :  { %v200_v35 = vpop.f32.mrf.mxu1 }
 0x1b0   :  { %v207_v36 = vadd.f32 %v200_v35, %v127_v34 }
 0x1b1   :  { %v332_v37 = vpop.f32.mrf.mxu1 }
 0x1b2   :  { %209 = vst.msk [vmem:[#allocation2] sm:$0xff] %vm31_vm0, %v207_v36 }
 0x1b3   :  { %v203_v39 = vpop.f32.mrf.mxu1 }
 0x1b4   :  { %v208_v40 = vadd.f32 %v203_v39, %v128_v38 }
 0x1b5   :  { %v333_v41 = vpop.f32.mrf.mxu1 }
 0x1b6   :  { %210 = vst.msk [vmem:[#allocation2 + $0x8] sm:$0xff] %vm31_vm0, %v208_v40 }
 0x1b9   :  { %v214_v44 = vld [vmem:[#allocation2] sm:$0xff] }
 0x1ba   :  { %v223_v45 = vadd.f32 %v299_v42, %v214_v44 }
 0x1bc   :  { %v227_v46 = vadd.f32 %v225_v43, %v223_v45 }
 0x1bd   :  { %v215_v48 = vld [vmem:[#allocation2 + $0x8] sm:$0xff] }
 0x1be   :  { %v231_v49 = vsel %vm31_vm0, %v227_v46, 0.0  ;;  %v224_v50 = vadd.f32 %v299_v42, %v215_v48 }
 0x1bf   :  { %232 = vadd.xlane.f32.xlu0 %v231_v49 }
 0x1c0   :  { %v228_v51 = vadd.f32 %v226_v47, %v224_v50 }
 0x1c2   :  { %v234_v52 = vsel %vm31_vm0, %v228_v51, 0.0 }
 0x1c3   :  { %235 = vadd.xlane.f32.xlu0 %v234_v52 }
 0x248   :  { %v233_v53 = vpop.xlane.xlu0 %232 }
 0x249   :  { %v238_v54 = vmul.f32 0.03125, %v233_v53 }
 0x24b   :  { %v240_v55 = vsub.f32 %v227_v46, %v238_v54 }
 0x24c   :  { %v236_v56 = vpop.xlane.xlu0 %235 }
 0x24d   :  { %v239_v57 = vmul.f32 0.03125, %v236_v56  ;;  %v242_v58 = vmul.f32 %v240_v55, %v240_v55 }
 0x24f   :  { %v241_v59 = vsub.f32 %v228_v51, %v239_v57  ;;  %v244_v60 = vsel %vm31_vm0, %v242_v58, 0.0 }
 0x250   :  { %245 = vadd.xlane.f32.xlu1 %v244_v60 }
 0x251   :  { %v243_v61 = vmul.f32 %v241_v59, %v241_v59 }
 0x253   :  { %v247_v62 = vsel %vm31_vm0, %v243_v61, 0.0 }
 0x254   :  { %248 = vadd.xlane.f32.xlu1 %v247_v62 }
 0x2d9   :  { %v246_v63 = vpop.xlane.xlu1 %245 }
 0x2da   :  { %v250_v0 = vmul.f32 0.03125, %v246_v63 }
 0x2dc   :  { %v252_v1 = vadd.f32 1e-12, %v250_v0 }
 0x2dd   :  { %v249_v2 = vpop.xlane.xlu1 %248 }
 0x2de   :  { %348 = vrsqrt.f32 %v252_v1  ;;  %v251_v3 = vmul.f32 0.03125, %v249_v2 }
 0x2e0   :  { %v253_v4 = vadd.f32 1e-12, %v251_v3 }
 0x2e2   :  { %350 = vrsqrt.f32 %v253_v4 }
 0x2eb   :  { %v349_v5 = vpop.eup %348 }
 0x2ec   :  { %v256_v7 = vmul.f32 %v349_v5, %v240_v55 }
 0x2ee   :  { %v264_v9 = vmul.f32 %v300_v6, %v256_v7 }
 0x2ef   :  { %v351_v10 = vpop.eup %350 }
 0x2f0   :  { %v272_v11 = vadd.f32 %v301_v8, %v264_v9  ;;  %v257_v12 = vmul.f32 %v351_v10, %v241_v59 }
 0x2f2   :  { %v304_v13 = vpack.c.bf16 %v272_v11, %v272_v11  ;;  %v265_v14 = vmul.f32 %v300_v6, %v257_v12 }
 0x2f4   :  { %283 = vst.msk [vmem:[%s454_s7] sm:$0xf] %vm282_vm3, %v304_v13  ;;  %v273_v15 = vadd.f32 %v301_v8, %v265_v14 }
 0x2f6   :  { %v305_v16 = vpack.c.bf16 %v273_v15, %v273_v15 }
 0x2f8   :  { %284 = vst.msk [vmem:[%s454_s7 + $0x4] sm:$0xf] %vm282_vm3, %v305_v16 }

// kernel: bert_forward.7
= control target key start
LH: loop header
LB: loop body
LE: loop exit
PB: predicated region body
PF: predicated region fallthrough
CT: control target
= control target key end

     0   :  { %s1187_s24 = smov 0   ;;  %s1314_s0 = inlined_call_operand.vmem [shape: bf16[16,32], index: 0, kind: input, shape index: {}]   ;;  %s1315_s1 = inlined_call_operand.vmem [shape: bf16[32,96], index: 1, kind: input, shape index: {}]   ;;  %s1316_s2 = inlined_call_operand.vmem [shape: f32[1,96], index: 2, kind: input, shape index: {}]   ;;  %s1317_s3 = inlined_call_operand.vmem [shape: bf16[32,32], index: 3, kind: input, shape index: {}]   ;;  %s1318_s4 = inlined_call_operand.vmem [shape: f32[1,32], index: 4, kind: input, shape index: {}]   ;;  %s1319_s5 = inlined_call_operand.vmem [shape: f32[1,32], index: 5, kind: input, shape index: {}]   ;;  %s1320_s6 = inlined_call_operand.vmem [shape: f32[1,32], index: 6, kind: input, shape index: {}]   ;;  %s1321_s7 = inlined_call_operand.vmem [shape: bf16[16,32], index: 7, kind: output, shape index: {}]  }
   0x1 LB: > { %s964_s25 = sadd.s32 4294967295, %s1129_s24   ;;  %p968_p0 = scmp.ge.s32.totalorder %s1129_s24, 1  ;;  %s1129_s24 = sphi %s1187_s24, %s17_s24  }
   0x2   : > { %p236_p1 = scmp.lt.s32.totalorder %s1129_s24, 3 }
   0x4   : > { %p237_p2 = pnand %p968_p0, %p236_p1 }
   0x5   : > { %p266_p3 = scmp.lt.s32.totalorder (!%p237_p2), %s964_s25, 1  ;;  %s1133_s13 = smov (!%p237_p2), 120  }
   0x6   : > { %240 = sbr.rel (%p237_p2) target bundleno = 1737 (0x6c9), region = 48  ;;  %s1134_s14 = smov (!%p237_p2), 96  }
   0x7   : > { %s1135_s15 = smov (!%p237_p2), 80   ;;  %s1136_s16 = smov (!%p237_p2), 88  }
   0x8   : > { %s1137_s17 = smov (!%p237_p2), 72   ;;  %s1138_s18 = smov (!%p237_p2), 112  }
   0x9   : > { %s1139_s19 = smov (!%p237_p2), 104   ;;  %s1140_s20 = smov (!%p237_p2), 56  }
   0xa   : > { %s1141_s21 = smov (!%p237_p2), 64   ;;  %s1142_s22 = smov (!%p237_p2), 40  }
   0xb   : > { %v1101_v0 = vld [vmem:[%s1315_s1 + $0x8] sm:$0xff]   ;;  %v1131_v1 = vmov 0.0   ;;  %v1102_v2 = vld [vmem:[%s1315_s1] sm:$0xff]   ;;  %vm1132_vm0 = vmmov 0   ;;  %s1323_s25 = smov (!%p266_p3, %s964_s25), 1  ;;  %vm299_vm1 = vcmask 261120  }
   0xc   : > { %1013 = vmatprep.subr.bf16.mxu0 %v1131_v1  ;;  %1021 = vmatprep.subr.bf16.mxu1 %v1131_v1  ;;  %s969_s30 = sshll.u32 %s1323_s25, 2  ;;  %v971_v4 = vld [vmem:[%s1316_s2] ss:$0 sm:$0xff]  ;;  %vm343_vm2 = vcmask 785408   ;;  %vm350_vm3 = vcmask 64512   ;;  %s1143_s23 = smov 48  }
   0xd   : > { %1014 = vmatpush3.bf16.msra.mxu0 %v1101_v0  ;;  %1017 = vmatprep.mubr.msk.bf16.mxu0 %vm1132_vm0, %v1131_v1  ;;  %s269_s10 = scalar_lea.vmem %s1314_s0, %s969_s30  ;;  %vm415_vm4 = vcmask 1043456   ;;  %s1144_s26 = smov 8   ;;  %vm805_vm5 = vcmask 130048   ;;  %vm807_vm6 = vcmask 195584   ;;  %vm909_vm7 = vcmask 257024  }
   0xe   : > { %1015 = vmatprep.subr.bf16.mxu0 %v1131_v1  ;;  %1023 = vmatprep.mubr.msk.bf16.mxu1 %vm1132_vm0, %v1131_v1  ;;  %v1217_v3 = vld [vmem:[%s269_s10] sm:$0xf]  ;;  %s1145_s9 = smov 16   ;;  %s1146_s10 = smov 24  }
  0x11   : > { %1016 = vmatpush3.bf16.msra.mxu0 %v1102_v2 }
  0x12   : > { %1027 = vmatprep.subr.bf16.mxu0 %v1131_v1 }
  0x14   : > { %1018 = vmatmul.mubr.msk.bf16.vlgmr.msra.gmra.mxu0 %vm299_vm1, %v1217_v3 }
  0x15   : > { %1029 = vmatprep.mubr.msk.bf16.mxu0 %vm1132_vm0, %v1131_v1 }
  0xd4   : > { %v337_v5 = vpop.f32.mrf.mxu0 }
  0xd5   : > { %v338_v6 = vadd.f32 %v971_v4, %v337_v5 }
  0xd6   : > { %v1019_v7 = vpop.f32.mrf.mxu0 }
  0xd7   : > { %344 = vst.msk [vmem:[#allocation2] sm:$0xff] %vm343_vm2, %v338_v6 }
  0xd8   : > { %v340_v8 = vpop.f32.mrf.mxu0 }
  0xda   : > { %v1020_v9 = vpop.f32.mrf.mxu0 }
  0xde   : > { %v345_v10 = vld [vmem:[#allocation2] sm:$0xff] }
  0xdf   : > { %v1226_v11 = vpack.c.bf16 %v345_v10, %v345_v10 }
  0xe1   : > { %459 = vrot.lane.b32.xlu1 %v1226_v11, %s1133_s13  ;;  %348 = vrot.lane.b32.xlu0 %v1226_v11, %s1134_s14 }
  0xe5   : > { %572 = vrot.lane.b32.xlu1 %v1226_v11, %s1135_s15  ;;  %461 = vrot.lane.b32.xlu0 %v1226_v11, %s1136_s16 }
  0xe9   : > { %683 = vrot.lane.b32.xlu1 %v1226_v11, %s1137_s17  ;;  %570 = vrot.lane.b32.xlu0 %v1226_v11, %s1138_s18 }
  0xed   : > { %681 = vrot.lane.b32.xlu0 %v1226_v11, %s1139_s19  ;;  %s273_s19 = scalar_lea.vmem %s1321_s7, %s969_s30 }
 0x153   : > { %v349_v12 = vpop.permute.xlu0 %348  ;;  %v460_v15 = vpop.permute.xlu1 %459 }
 0x154   : > { %v355_v13 = vsel %vm350_vm3, %v349_v12, 0 }
 0x155   : > { %1022 = vmatpush3.bf16.xpose.msra.mxu1 %v355_v13 }
 0x156   : > { %1033 = vmatprep.subr.bf16.mxu1 %v1131_v1 }
 0x157   : > { %v462_v14 = vpop.permute.xlu0 %461  ;;  %v573_v17 = vpop.permute.xlu1 %572 }
 0x158   : > { %v467_v16 = vsel %vm350_vm3, %v462_v14, 0  ;;  %v578_v18 = vsel %vm350_vm3, %v573_v17, 0 }
 0x15b   : > { %v684_v19 = vpop.permute.xlu1 %683  ;;  %v571_v20 = vpop.permute.xlu0 %570 }
 0x15c   : > { %1024 = vmatmul.mubr.msk.bf16.vlgmr.msra.gmra.mxu1 %vm350_vm3, %v1226_v11  ;;  %v689_v21 = vsel %vm350_vm3, %v684_v19, 0 }
 0x15d   : > { %1034 = vmatpush3.bf16.xpose.msra.mxu1 %v467_v16  ;;  %1035 = vmatprep.mubr.msk.bf16.mxu1 %vm1132_vm0, %v1131_v1 }
 0x15e   : > { %1045 = vmatprep.subr.bf16.mxu1 %v1131_v1 }
 0x15f   : > { %v682_v22 = vpop.permute.xlu0 %681 }
 0x164   : > { %1036 = vmatmul.mubr.msk.bf16.vlgmr.msra.gmra.mxu1 %vm350_vm3, %v460_v15 }
 0x165   : > { %1046 = vmatpush3.bf16.xpose.msra.mxu1 %v578_v18  ;;  %1047 = vmatprep.mubr.msk.bf16.mxu1 %vm1132_vm0, %v1131_v1 }
 0x166   : > { %1057 = vmatprep.subr.bf16.mxu1 %v1131_v1 }
 0x16c   : > { %1048 = vmatmul.mubr.msk.bf16.vlgmr.msra.gmra.mxu1 %vm350_vm3, %v571_v20 }
 0x16d   : > { %1058 = vmatpush3.bf16.xpose.msra.mxu1 %v689_v21  ;;  %1059 = vmatprep.mubr.msk.bf16.mxu1 %vm1132_vm0, %v1131_v1 }
 0x16e   : > { %1069 = vmatprep.subr.bf16.mxu1 %v1131_v1 }
 0x174   : > { %1060 = vmatmul.mubr.msk.bf16.vlgmr.msra.gmra.mxu1 %vm350_vm3, %v682_v22 }
 0x175   : > { %1073 = vmatprep.mubr.msk.bf16.mxu1 %vm1132_vm0, %v1131_v1 }
 0x21c   : > { %v391_v23 = vpop.f32.mrf.mxu1 }
 0x21d   : > { %v397_v24 = vmul.f32 0.35355338, %v391_v23 }
 0x21e   : > { %v1025_v25 = vpop.f32.mrf.mxu1 }
 0x21f   : > { %v398_v26 = vsel %vm350_vm3, %v397_v24, -inf }
 0x220   : > { %399 = vmax.xlane.f32.xlu1 %v398_v26  ;;  %v394_v27 = vpop.f32.mrf.mxu1 }
 0x222   : > { %v1026_v28 = vpop.f32.mrf.mxu1 }
 0x224   : > { %v503_v29 = vpop.f32.mrf.mxu1 }
 0x225   : > { %v509_v30 = vmul.f32 0.35355338, %v503_v29 }
 0x226   : > { %v1037_v31 = vpop.f32.mrf.mxu1 }
 0x227   : > { %v510_v32 = vsel %vm350_vm3, %v509_v30, -inf }
 0x228   : > { %511 = vmax.xlane.f32.xlu0 %v510_v32  ;;  %v506_v33 = vpop.f32.mrf.mxu1 }
 0x22a   : > { %v1038_v34 = vpop.f32.mrf.mxu1 }
 0x22c   : > { %v614_v35 = vpop.f32.mrf.mxu1 }
 0x22d   : > { %v620_v36 = vmul.f32 0.35355338, %v614_v35 }
 0x22e   : > { %v1049_v37 = vpop.f32.mrf.mxu1 }
 0x22f   : > { %v621_v38 = vsel %vm350_vm3, %v620_v36, -inf  ;;  %v1103_v37 = vld [vmem:[%s1317_s3 + $0x8] sm:$0xff]  }
 0x230   : > { %622 = vmax.xlane.f32.xlu0 %v621_v38  ;;  %v617_v39 = vpop.f32.mrf.mxu1  ;;  %1070 = vmatpush3.bf16.msra.mxu1 %v1103_v37  ;;  %v1104_v38 = vld [vmem:[%s1317_s3] sm:$0xff]  }
 0x231   : > { %1071 = vmatprep.subr.bf16.mxu1 %v1131_v1 }
 0x232   : > { %v1050_v40 = vpop.f32.mrf.mxu1 }
 0x234   : > { %v725_v41 = vpop.f32.mrf.mxu1  ;;  %1072 = vmatpush3.bf16.msra.mxu1 %v1104_v38 }
 0x235   : > { %v731_v42 = vmul.f32 0.35355338, %v725_v41 }
 0x236   : > { %v1061_v43 = vpop.f32.mrf.mxu1 }
 0x237   : > { %v732_v44 = vsel %vm350_vm3, %v731_v42, -inf }
 0x238   : > { %733 = vmax.xlane.f32.xlu1 %v732_v44  ;;  %v728_v45 = vpop.f32.mrf.mxu1 }
 0x23a   : > { %v1062_v46 = vpop.f32.mrf.mxu1 }
 0x2a9   : > { %v400_v47 = vpop.xlane.xlu1 %399 }
 0x2aa   : > { %v401_v48 = vsub.f32 %v397_v24, %v400_v47 }
 0x2ac   : > { %v402_v49 = vmul.f32 1.442695, %v401_v48 }
 0x2ae   : > { %1105 = vpow2.f32 %v402_v49 }
 0x2b1   : > { %v512_v50 = vpop.xlane.xlu0 %511 }
 0x2b2   : > { %v513_v51 = vsub.f32 %v509_v30, %v512_v50 }
 0x2b4   : > { %v514_v52 = vmul.f32 1.442695, %v513_v51 }
 0x2b6   : > { %1107 = vpow2.f32 %v514_v52 }
 0x2b9   : > { %v623_v53 = vpop.xlane.xlu0 %622 }
 0x2ba   : > { %v624_v54 = vsub.f32 %v620_v36, %v623_v53  ;;  %v983_v53 = vld [vmem:[%s1318_s4] ss:$0 sm:$0xff] }
 0x2bb   : > { %v1106_v55 = vpop.eup %1105 }
 0x2bc   : > { %v625_v56 = vmul.f32 1.442695, %v624_v54  ;;  %v404_v57 = vsel %vm350_vm3, %v1106_v55, 0.0  ;;  %v876_v54 = vunpack.c.l.bf16 %v1217_v3 }
 0x2bd   : > { %405 = vadd.xlane.f32.xlu0 %v404_v57 }
 0x2be   : > { %1109 = vpow2.f32 %v625_v56 }
 0x2c1   : > { %v734_v62 = vpop.xlane.xlu1 %733 }
 0x2c2   : > { %v735_v63 = vsub.f32 %v731_v42, %v734_v62 }
 0x2c3   : > { %v1108_v58 = vpop.eup %1107 }
 0x2c4   : > { %v516_v59 = vsel %vm350_vm3, %v1108_v58, 0.0  ;;  %v736_v0 = vmul.f32 1.442695, %v735_v63 }
 0x2c5   : > { %517 = vadd.xlane.f32.xlu1 %v516_v59 }
 0x2c6   : > { %1111 = vpow2.f32 %v736_v0 }
 0x2cb   : > { %v1110_v60 = vpop.eup %1109 }
 0x2cc   : > { %v627_v61 = vsel %vm350_vm3, %v1110_v60, 0.0 }
 0x2cd   : > { %628 = vadd.xlane.f32.xlu0 %v627_v61 }
 0x2d3   : > { %v1112_v2 = vpop.eup %1111 }
 0x2d4   : > { %v738_v4 = vsel %vm350_vm3, %v1112_v2, 0.0 }
 0x2d6   : > { %522 = vrot.lane.b32.xlu1 %v1226_v11, %s1140_s20 }
 0x2e3   : > { %410 = vrot.lane.b32.xlu0 %v1226_v11, %s1141_s21 }
 0x2e7   : > { %744 = vrot.lane.b32.xlu0 %v1226_v11, %s1142_s22 }
 0x2fa   : > { %739 = vadd.xlane.f32.xlu1 %v738_v4 }
 0x30b   : > { %633 = vrot.lane.b32.xlu1 %v1226_v11, %s1143_s23 }
 0x346   : > { %v406_v5 = vpop.xlane.xlu0 %405 }
 0x347   : > { %1113 = vrcp.f32 %v406_v5 }
 0x34e   : > { %v518_v6 = vpop.xlane.xlu1 %517 }
 0x34f   : > { %1115 = vrcp.f32 %v518_v6 }
 0x352   : > { %v523_v13 = vpop.permute.xlu1 %522 }
 0x353   : > { %v528_v16 = vsel %vm415_vm4, %v523_v13, 0 }
 0x354   : > { %v1114_v7 = vpop.eup %1113 }
 0x355   : > { %v408_v9 = vmul.f32 %v1114_v7, %v1106_v55 }
 0x356   : > { %v629_v8 = vpop.xlane.xlu0 %628 }
 0x357   : > { %v409_v14 = vpack.c.bf16 %v408_v9, %v408_v9  ;;  %1117 = vrcp.f32 %v629_v8  ;;  %v987_v8 = vld [vmem:[%s1319_s5] ss:$0 sm:$0xff] }
 0x35a   : > { %v411_v10 = vpop.permute.xlu0 %410 }
 0x35b   : > { %v417_v12 = vsel %vm415_vm4, %v411_v10, 0  ;;  %v988_v10 = vld [vmem:[%s1320_s6] ss:$0 sm:$0xff] }
 0x35c   : > { %1028 = vmatpush3.bf16.msra.mxu0 %v417_v12  ;;  %v1116_v15 = vpop.eup %1115 }
 0x35d   : > { %1039 = vmatprep.subr.bf16.mxu0 %v1131_v1  ;;  %v520_v11 = vmul.f32 %v1116_v15, %v1108_v58 }
 0x35e   : > { %v745_v23 = vpop.permute.xlu0 %744 }
 0x35f   : > { %1030 = vmatmul.mubr.msk.bf16.vlgmr.msra.gmra.mxu0 %vm350_vm3, %v409_v14  ;;  %v521_v17 = vpack.c.bf16 %v520_v11, %v520_v11  ;;  %v750_v25 = vsel %vm415_vm4, %v745_v23, 0 }
 0x360   : > { %1040 = vmatpush3.bf16.msra.mxu0 %v528_v16  ;;  %1041 = vmatprep.mubr.msk.bf16.mxu0 %vm1132_vm0, %v1131_v1 }
 0x361   : > { %1051 = vmatprep.subr.bf16.mxu0 %v1131_v1 }
 0x364   : > { %v1118_v18 = vpop.eup %1117 }
 0x365   : > { %v631_v20 = vmul.f32 %v1118_v18, %v1110_v60 }
 0x367   : > { %1042 = vmatmul.mubr.msk.bf16.vlgmr.msra.gmra.mxu0 %vm350_vm3, %v521_v17  ;;  %v632_v24 = vpack.c.bf16 %v631_v20, %v631_v20 }
 0x368   : > { %1053 = vmatprep.mubr.msk.bf16.mxu0 %vm1132_vm0, %v1131_v1 }
 0x383   : > { %v740_v19 = vpop.xlane.xlu1 %739 }
 0x384   : > { %1119 = vrcp.f32 %v740_v19 }
 0x387   : > { %v634_v21 = vpop.permute.xlu1 %633 }
 0x388   : > { %v639_v22 = vsel %vm415_vm4, %v634_v21, 0 }
 0x389   : > { %1052 = vmatpush3.bf16.msra.mxu0 %v639_v22 }
 0x38a   : > { %1063 = vmatprep.subr.bf16.mxu0 %v1131_v1 }
 0x38c   : > { %1054 = vmatmul.mubr.msk.bf16.vlgmr.msra.gmra.mxu0 %vm350_vm3, %v632_v24 }
 0x38d   : > { %1064 = vmatpush3.bf16.msra.mxu0 %v750_v25  ;;  %1065 = vmatprep.mubr.msk.bf16.mxu0 %vm1132_vm0, %v1131_v1 }
 0x391   : > { %v1120_v26 = vpop.eup %1119 }
 0x392   : > { %v742_v27 = vmul.f32 %v1120_v26, %v1112_v2 }
 0x394   : > { %v743_v28 = vpack.c.bf16 %v742_v27, %v742_v27 }
 0x396   : > { %1066 = vmatmul.mubr.msk.bf16.vlgmr.msra.gmra.mxu0 %vm350_vm3, %v743_v28 }
 0x41f   : > { %v453_v29 = vpop.f32.mrf.mxu0 }
 0x421   : > { %v1031_v30 = vpop.f32.mrf.mxu0 }
 0x423   : > { %v456_v31 = vpop.f32.mrf.mxu0 }
 0x425   : > { %v1032_v32 = vpop.f32.mrf.mxu0 }
 0x427   : > { %v564_v33 = vpop.f32.mrf.mxu0 }
 0x428   : > { %793 = vrot.lane.b32.xlu1 %v564_v33, %s1144_s26 }
 0x429   : > { %v1043_v34 = vpop.f32.mrf.mxu0 }
 0x42b   : > { %v567_v35 = vpop.f32.mrf.mxu0 }
 0x42d   : > { %v1044_v36 = vpop.f32.mrf.mxu0 }
 0x44c   : > { %v675_v39 = vpop.f32.mrf.mxu0 }
 0x44d   : > { %797 = vrot.lane.b32.xlu0 %v675_v39, %s1145_s9 }
 0x44e   : > { %v1055_v40 = vpop.f32.mrf.mxu0 }
 0x450   : > { %v678_v41 = vpop.f32.mrf.mxu0 }
 0x452   : > { %v1056_v42 = vpop.f32.mrf.mxu0 }
 0x456   : > { %v786_v43 = vpop.f32.mrf.mxu0 }
 0x457   : > { %801 = vrot.lane.b32.xlu1 %v786_v43, %s1146_s10 }
 0x458   : > { %v1067_v44 = vpop.f32.mrf.mxu0 }
 0x45a   : > { %v789_v45 = vpop.f32.mrf.mxu0 }
 0x45c   : > { %v1068_v46 = vpop.f32.mrf.mxu0 }
 0x49a   : > { %v794_v47 = vpop.permute.xlu1 %793 }
 0x49b   : > { %v804_v48 = vsel %vm350_vm3, %v453_v29, %v794_v47 }
 0x4bf   : > { %v798_v1 = vpop.permute.xlu0 %797 }
 0x4c0   : > { %v806_v49 = vsel %vm805_vm5, %v804_v48, %v798_v1 }
 0x4c9   : > { %v802_v50 = vpop.permute.xlu1 %801 }
 0x4ca   : > { %v808_v51 = vsel %vm807_vm6, %v806_v49, %v802_v50 }
 0x4cb   : > { %v809_v52 = vpack.c.bf16 %v808_v51, %v808_v51 }
 0x4cd   : > { %1074 = vmatmul.mubr.msk.bf16.vlgmr.msra.gmra.mxu1 %vm299_vm1, %v809_v52 }
 0x58d   : > { %v870_v55 = vpop.f32.mrf.mxu1 }
 0x58e   : > { %v871_v56 = vadd.f32 %v983_v53, %v870_v55 }
 0x58f   : > { %v1075_v57 = vpop.f32.mrf.mxu1 }
 0x590   : > { %v877_v58 = vadd.f32 %v876_v54, %v871_v56 }
 0x591   : > { %v873_v59 = vpop.f32.mrf.mxu1 }
 0x592   : > { %v880_v60 = vsel %vm299_vm1, %v877_v58, 0.0 }
 0x593   : > { %881 = vadd.xlane.f32.xlu0 %v880_v60  ;;  %v1076_v61 = vpop.f32.mrf.mxu1 }
 0x61c   : > { %v882_v62 = vpop.xlane.xlu0 %881 }
 0x61d   : > { %v884_v63 = vmul.f32 0.03125, %v882_v62 }
 0x61f   : > { %v885_v0 = vsub.f32 %v877_v58, %v884_v63 }
 0x621   : > { %v886_v2 = vmul.f32 %v885_v0, %v885_v0 }
 0x623   : > { %v887_v4 = vsel %vm299_vm1, %v886_v2, 0.0 }
 0x624   : > { %888 = vadd.xlane.f32.xlu1 %v887_v4 }
 0x6ad   : > { %v889_v5 = vpop.xlane.xlu1 %888 }
 0x6ae   : > { %v890_v6 = vmul.f32 0.03125, %v889_v5 }
 0x6b0   : > { %v891_v3 = vadd.f32 1e-12, %v890_v6 }
 0x6b2   : > { %1121 = vrsqrt.f32 %v891_v3 }
 0x6bf   : > { %v1122_v7 = vpop.eup %1121 }
 0x6c0   : > { %v893_v9 = vmul.f32 %v1122_v7, %v885_v0 }
 0x6c2   : > { %v900_v12 = vmul.f32 %v987_v8, %v893_v9 }
 0x6c4   : > { %v907_v13 = vadd.f32 %v988_v10, %v900_v12 }
 0x6c6   : > { %v908_v14 = vpack.c.bf16 %v907_v13, %v907_v13 }
 0x6c8   : > { %910 = vst.msk [vmem:[%s273_s19] sm:$0xf] %vm909_vm7, %v908_v14 }
 0x6c9 PF: > { %s17_s24 = sadd.s32 1, %s1129_s24  }
 0x6ca   : > { %p14_p4 = scmp.ge.s32.totalorder %s17_s24, 4  }
 0x6cc   :  { %16 = sbr.rel (!%p14_p4) target bundleno = 1 (0x1), region = 78 }

</bundles_post_ra>
